<compile_context>
chip_gen: v5e
topology: v5e:2x2
jax: 0.10.0
libtpu: 0.0.40
codegen_flags: <defaults>
</compile_context>

<pallas_src>
import math
import functools

import jax
import jax.numpy as jnp
from jax.experimental import pallas as pl
from jax.experimental.pallas import tpu as pltpu


# ------------------------- fused decoder-layer kernel -------------------------

def _decoder_layer_kernel(
    tgt_ref, mem_ref,
    s_inw_ref, s_inb_ref, s_ow_ref, s_ob_ref,
    c_inw_ref, c_inb_ref, c_ow_ref, c_ob_ref,
    w1_ref, b1_ref, w2_ref, b2_ref,
    norms_ref,
    out_ref, attn_ref,
    ctx_ref,
    *, nhead, eps):
  """Processes one batch element of the full decoder layer, entirely in VMEM."""
  T, D = tgt_ref.shape
  S = mem_ref.shape[0]
  Dh = D // nhead

  x = tgt_ref[...]          # (T, D) f32
  mem = mem_ref[...]        # (S, D) f32
  norms = norms_ref[...]    # (6, D): [n1_w, n1_b, n2_w, n2_b, n3_w, n3_b]

  def layer_norm(z, idx):
    w = norms[2 * idx:2 * idx + 1, :]       # (1, D)
    b = norms[2 * idx + 1:2 * idx + 2, :]   # (1, D)
    mean = jnp.mean(z, axis=-1, keepdims=True)
    c = z - mean
    var = jnp.mean(c * c, axis=-1, keepdims=True)
    return (c * jax.lax.rsqrt(var + eps)) * w + b

  def mha(q_src, kv_src, inw, inb, ow, ob, *, is_self, want_probs):
    # QKV projections fused into as few MXU calls as possible.
    if is_self:
      qkv = jnp.dot(q_src, inw, preferred_element_type=jnp.float32) + inb
      q = qkv[:, :D]
      k = qkv[:, D:2 * D]
      v = qkv[:, 2 * D:]
    else:
      q = (jnp.dot(q_src, inw[:, :D], preferred_element_type=jnp.float32)
           + inb[:, :D])
      kv = (jnp.dot(kv_src, inw[:, D:], preferred_element_type=jnp.float32)
            + inb[:, D:])
      k = kv[:, :D]
      v = kv[:, D:]

    p_sum = None
    for h in range(nhead):                   # short static unrolled loop
      lo = h * Dh
      hi = lo + Dh
      qh = q[:, lo:hi]
      kh = k[:, lo:hi]
      vh = v[:, lo:hi]
      # 1/sqrt(Dh) is already folded into the Q projection weights.
      s = jax.lax.dot_general(qh, kh, (((1,), (1,)), ((), ())),
                              preferred_element_type=jnp.float32)   # (Tq, Skv)
      m = jnp.max(s, axis=-1, keepdims=True)
      e = jnp.exp(s - m)
      p = e / jnp.sum(e, axis=-1, keepdims=True)
      ctx_ref[:, lo:hi] = jnp.dot(p, vh, preferred_element_type=jnp.float32)
      if want_probs:
        p_sum = p if p_sum is None else p_sum + p

    ctx = ctx_ref[...]                       # (Tq, D)
    o = jnp.dot(ctx, ow, preferred_element_type=jnp.float32) + ob
    return o, p_sum

  # ---- self-attention + Add & LayerNorm (probs discarded, never written) ----
  sa, _ = mha(x, x, s_inw_ref[...], s_inb_ref[...], s_ow_ref[...], s_ob_ref[...],
              is_self=True, want_probs=False)
  x = layer_norm(x + sa, 0)

  # ---- cross-attention + Add & LayerNorm (head-averaged probs emitted) ----
  ca, p_sum = mha(x, mem, c_inw_ref[...], c_inb_ref[...], c_ow_ref[...],
                  c_ob_ref[...], is_self=False, want_probs=True)
  attn_ref[...] = (p_sum * (1.0 / nhead)).astype(attn_ref.dtype)
  x = layer_norm(x + ca, 1)

  # ---- feed-forward: linear1 -> exact GELU (erf) -> linear2, Add & LayerNorm ----
  h1 = jnp.dot(x, w1_ref[...], preferred_element_type=jnp.float32) + b1_ref[...]
  g = 0.5 * h1 * (1.0 + jax.lax.erf(h1 * (1.0 / math.sqrt(2.0))))
  f = jnp.dot(g, w2_ref[...], preferred_element_type=jnp.float32) + b2_ref[...]
  x = layer_norm(x + f, 2)

  out_ref[...] = x.astype(out_ref.dtype)


# ------------------------- wrappers -------------------------

def prepare_params(params, nhead):
  """One-time transform of torch-layout params into kernel-ready arrays:
  weights transposed to (Din, Dout), softmax scale folded into the Q projection,
  biases reshaped to (1, Dout), LayerNorm params stacked into one (6, D) slab."""
  D = params["norm1_w"].shape[0]
  scale = 1.0 / math.sqrt(D // nhead)

  def prep_attn(p):
    w = p["in_proj_w"]                       # (3D, D) torch layout
    b = p["in_proj_b"]                       # (3D,)
    w = w.at[:D, :].multiply(scale)          # fold 1/sqrt(Dh) into Wq
    b = b.at[:D].multiply(scale)
    return (w.T,                             # in_w  (D, 3D)
            b.reshape(1, 3 * D),             # in_b  (1, 3D)
            p["out_w"].T,                    # out_w (D, D)
            p["out_b"].reshape(1, D))        # out_b (1, D)

  s_inw, s_inb, s_ow, s_ob = prep_attn(params["self_attn"])
  c_inw, c_inb, c_ow, c_ob = prep_attn(params["cross_attn"])
  w1 = params["linear1_w"].T                 # (D, Dff)
  b1 = params["linear1_b"].reshape(1, -1)
  w2 = params["linear2_w"].T                 # (Dff, D)
  b2 = params["linear2_b"].reshape(1, -1)
  norms = jnp.stack([params["norm1_w"], params["norm1_b"],
                     params["norm2_w"], params["norm2_b"],
                     params["norm3_w"], params["norm3_b"]], axis=0)  # (6, D)
  return (s_inw, s_inb, s_ow, s_ob, c_inw, c_inb, c_ow, c_ob,
          w1, b1, w2, b2, norms)


@functools.partial(jax.jit, static_argnames=("nhead",))
def transformer_decoder_forward(tgt, memory, prepared, *, nhead):
  """Matches TransformerDecoder.forward with all masks = None, eval mode.
  tgt: (T, B, D) seq-first; memory: (S, B, D) seq-first.
  Returns (out (T, B, D), attn_dist (B, T, S))."""
  T, B, D = tgt.shape
  S = memory.shape[0]
  (s_inw, s_inb, s_ow, s_ob, c_inw, c_inb, c_ow, c_ob,
   w1, b1, w2, b2, norms) = prepared
  Dff = w1.shape[1]

  kernel = functools.partial(_decoder_layer_kernel, nhead=nhead, eps=1e-12)

  def full2d(shape):
    return pl.BlockSpec(shape, lambda b: (0, 0))

  out_btd, attn = pl.pallas_call(
      kernel,
      grid=(B,),
      out_shape=(jax.ShapeDtypeStruct((B, T, D), tgt.dtype),
                 jax.ShapeDtypeStruct((B, T, S), jnp.float32)),
      in_specs=[
          pl.BlockSpec((None, T, D), lambda b: (b, 0, 0)),   # tgt (batch-first)
          pl.BlockSpec((None, S, D), lambda b: (b, 0, 0)),   # memory
          full2d((D, 3 * D)), full2d((1, 3 * D)),            # self-attn in_proj
          full2d((D, D)), full2d((1, D)),                    # self-attn out_proj
          full2d((D, 3 * D)), full2d((1, 3 * D)),            # cross-attn in_proj
          full2d((D, D)), full2d((1, D)),                    # cross-attn out_proj
          full2d((D, Dff)), full2d((1, Dff)),                # linear1
          full2d((Dff, D)), full2d((1, D)),                  # linear2
          full2d((6, D)),                                    # stacked LayerNorms
      ],
      out_specs=(pl.BlockSpec((None, T, D), lambda b: (b, 0, 0)),
                 pl.BlockSpec((None, T, S), lambda b: (b, 0, 0))),
      scratch_shapes=[pltpu.VMEM((T, D), jnp.float32)],      # per-head ctx slab
      compiler_params=pltpu.CompilerParams(
          dimension_semantics=("parallel",)),
  )(tgt.transpose(1, 0, 2), memory.transpose(1, 0, 2),
    s_inw, s_inb, s_ow, s_ob, c_inw, c_inb, c_ow, c_ob,
    w1, b1, w2, b2, norms)

  return out_btd.transpose(1, 0, 2), attn


# ------------------------- pure-JAX reference (for sanity check) -------------------------

def _ref_mha(query, key, value, p, nhead):
  T, B, D = query.shape
  S = key.shape[0]
  Dh = D // nhead
  Wq, Wk, Wv = jnp.split(p["in_proj_w"], 3, axis=0)
  bq, bk, bv = jnp.split(p["in_proj_b"], 3)
  q = query @ Wq.T + bq
  k = key @ Wk.T + bk
  v = value @ Wv.T + bv
  qh = q.reshape(T, B, nhead, Dh).transpose(1, 2, 0, 3)
  kh = k.reshape(S, B, nhead, Dh).transpose(1, 2, 0, 3)
  vh = v.reshape(S, B, nhead, Dh).transpose(1, 2, 0, 3)
  s = jnp.einsum("bhtd,bhsd->bhts", qh * (1.0 / math.sqrt(Dh)), kh)
  probs = jax.nn.softmax(s, axis=-1)
  o = jnp.einsum("bhts,bhsd->bhtd", probs, vh)
  o = o.transpose(2, 0, 1, 3).reshape(T, B, D)
  out = o @ p["out_w"].T + p["out_b"]
  return out, jnp.mean(probs, axis=1)


def _ref_ln(x, w, b, eps=1e-12):
  mean = jnp.mean(x, axis=-1, keepdims=True)
  var = jnp.mean((x - mean) ** 2, axis=-1, keepdims=True)
  return (x - mean) / jnp.sqrt(var + eps) * w + b


def _ref_forward(tgt, memory, params, nhead):
  tgt2, _ = _ref_mha(tgt, tgt, tgt, params["self_attn"], nhead)
  x = _ref_ln(tgt + tgt2, params["norm1_w"], params["norm1_b"])
  tgt2, attn = _ref_mha(x, memory, memory, params["cross_attn"], nhead)
  x = _ref_ln(x + tgt2, params["norm2_w"], params["norm2_b"])
  h = x @ params["linear1_w"].T + params["linear1_b"]
  g = 0.5 * h * (1.0 + jax.lax.erf(h / math.sqrt(2.0)))
  tgt2 = g @ params["linear2_w"].T + params["linear2_b"]
  x = _ref_ln(x + tgt2, params["norm3_w"], params["norm3_b"])
  return x, attn


# ------------------------- parameter init -------------------------

def init_params(key, d_model, dff):
  ks = jax.random.split(key, 12)
  s = 0.05
  n = lambda k, shape: (jax.random.normal(k, shape, jnp.float32) * s)
  return {
      "self_attn": {
          "in_proj_w": n(ks[0], (3 * d_model, d_model)),
          "in_proj_b": n(ks[1], (3 * d_model,)),
          "out_w": n(ks[2], (d_model, d_model)),
          "out_b": n(ks[3], (d_model,)),
      },
      "cross_attn": {
          "in_proj_w": n(ks[4], (3 * d_model, d_model)),
          "in_proj_b": n(ks[5], (3 * d_model,)),
          "out_w": n(ks[6], (d_model, d_model)),
          "out_b": n(ks[7], (d_model,)),
      },
      "linear1_w": n(ks[8], (dff, d_model)),
      "linear1_b": n(ks[9], (dff,)),
      "linear2_w": n(ks[10], (d_model, dff)),
      "linear2_b": n(ks[11], (d_model,)),
      "norm1_w": jnp.ones((d_model,), jnp.float32),
      "norm1_b": jnp.zeros((d_model,), jnp.float32),
      "norm2_w": jnp.ones((d_model,), jnp.float32),
      "norm2_b": jnp.zeros((d_model,), jnp.float32),
      "norm3_w": jnp.ones((d_model,), jnp.float32),
      "norm3_b": jnp.zeros((d_model,), jnp.float32),
  }


# ------------------------- main -------------------------

if __name__ == "__main__":
  # small shapes: seq_t=8, seq_s=12, batch=2, d_model=32, nhead=4, dff=64
  T, S, B, D, H, DFF = 8, 12, 2, 32, 4, 64
  key = jax.random.PRNGKey(0)
  k_tgt, k_mem, k_par = jax.random.split(key, 3)

  tgt = jax.random.normal(k_tgt, (T, B, D), jnp.float32)     # (T, B, D) seq-first
  memory = jax.random.normal(k_mem, (S, B, D), jnp.float32)  # (S, B, D) seq-first
  params = init_params(k_par, D, DFF)
  prepared = prepare_params(params, H)   # one-time weight prep (transpose, scale fold)

  out, attn_dist = transformer_decoder_forward(tgt, memory, prepared, nhead=H)
  out = jax.block_until_ready(out)
  attn_dist = jax.block_until_ready(attn_dist)

  # sanity check against a pure-JAX reference
  ref_out, ref_attn = _ref_forward(tgt, memory, params, H)
  assert out.shape == (T, B, D)
  assert attn_dist.shape == (B, T, S)
  assert jnp.allclose(out, ref_out, atol=2e-4, rtol=2e-4)
  assert jnp.allclose(attn_dist, ref_attn, atol=2e-4, rtol=2e-4)

  print("KERNEL_OK")
</pallas_src>

<mosaic_0001>
module attributes {stable_mosaic.version = 11 : i64} {
  func.func @_decoder_layer_kernel(%arg0: i32, %arg1: memref<1x8x32xf32, #tpu.memory_space<vmem>>, %arg2: memref<1x12x32xf32, #tpu.memory_space<vmem>>, %arg3: memref<32x96xf32, #tpu.memory_space<vmem>>, %arg4: memref<1x96xf32, #tpu.memory_space<vmem>>, %arg5: memref<32x32xf32, #tpu.memory_space<vmem>>, %arg6: memref<1x32xf32, #tpu.memory_space<vmem>>, %arg7: memref<32x96xf32, #tpu.memory_space<vmem>>, %arg8: memref<1x96xf32, #tpu.memory_space<vmem>>, %arg9: memref<32x32xf32, #tpu.memory_space<vmem>>, %arg10: memref<1x32xf32, #tpu.memory_space<vmem>>, %arg11: memref<32x64xf32, #tpu.memory_space<vmem>>, %arg12: memref<1x64xf32, #tpu.memory_space<vmem>>, %arg13: memref<64x32xf32, #tpu.memory_space<vmem>>, %arg14: memref<1x32xf32, #tpu.memory_space<vmem>>, %arg15: memref<6x32xf32, #tpu.memory_space<vmem>>, %arg16: memref<1x8x32xf32, #tpu.memory_space<vmem>>, %arg17: memref<1x8x12xf32, #tpu.memory_space<vmem>>, %arg18: memref<8x32xf32, #tpu.memory_space<vmem>>) attributes {dimension_semantics = [#tpu.dimension_semantics<parallel>], iteration_bounds = array<i64: 2>, scalar_prefetch = 0 : i64, scratch_operands = 1 : i64, tpu.core_type = #tpu.core_type<tc>, window_params = [{transform_indices = @transform_0, window_bounds = array<i64: 1, 8, 32>}, {transform_indices = @transform_1, window_bounds = array<i64: 1, 12, 32>}, {pipeline_mode = #tpu.pipeline_mode<synchronous>, transform_indices = @transform_2, window_bounds = array<i64: 32, 96>}, {pipeline_mode = #tpu.pipeline_mode<synchronous>, transform_indices = @transform_3, window_bounds = array<i64: 1, 96>}, {pipeline_mode = #tpu.pipeline_mode<synchronous>, transform_indices = @transform_4, window_bounds = array<i64: 32, 32>}, {pipeline_mode = #tpu.pipeline_mode<synchronous>, transform_indices = @transform_5, window_bounds = array<i64: 1, 32>}, {pipeline_mode = #tpu.pipeline_mode<synchronous>, transform_indices = @transform_6, window_bounds = array<i64: 32, 96>}, {pipeline_mode = #tpu.pipeline_mode<synchronous>, transform_indices = @transform_7, window_bounds = array<i64: 1, 96>}, {pipeline_mode = #tpu.pipeline_mode<synchronous>, transform_indices = @transform_8, window_bounds = array<i64: 32, 32>}, {pipeline_mode = #tpu.pipeline_mode<synchronous>, transform_indices = @transform_9, window_bounds = array<i64: 1, 32>}, {pipeline_mode = #tpu.pipeline_mode<synchronous>, transform_indices = @transform_10, window_bounds = array<i64: 32, 64>}, {pipeline_mode = #tpu.pipeline_mode<synchronous>, transform_indices = @transform_11, window_bounds = array<i64: 1, 64>}, {pipeline_mode = #tpu.pipeline_mode<synchronous>, transform_indices = @transform_12, window_bounds = array<i64: 64, 32>}, {pipeline_mode = #tpu.pipeline_mode<synchronous>, transform_indices = @transform_13, window_bounds = array<i64: 1, 32>}, {pipeline_mode = #tpu.pipeline_mode<synchronous>, transform_indices = @transform_14, window_bounds = array<i64: 6, 32>}, {transform_indices = @transform_15, window_bounds = array<i64: 1, 8, 32>}, {transform_indices = @transform_16, window_bounds = array<i64: 1, 8, 12>}]} {
    %c0 = arith.constant 0 : index
    %c0_0 = arith.constant 0 : index
    %c0_1 = arith.constant 0 : index
    %0 = vector.load %arg1[%c0, %c0_0, %c0_1] : memref<1x8x32xf32, #tpu.memory_space<vmem>>, vector<1x8x32xf32>
    %1 = vector.shape_cast %0 : vector<1x8x32xf32> to vector<8x32xf32>
    %c0_2 = arith.constant 0 : index
    %c0_3 = arith.constant 0 : index
    %c0_4 = arith.constant 0 : index
    %2 = vector.load %arg2[%c0_2, %c0_3, %c0_4] : memref<1x12x32xf32, #tpu.memory_space<vmem>>, vector<1x12x32xf32>
    %3 = vector.shape_cast %2 : vector<1x12x32xf32> to vector<12x32xf32>
    %c0_5 = arith.constant 0 : index
    %c0_6 = arith.constant 0 : index
    %4 = vector.load %arg15[%c0_5, %c0_6] : memref<6x32xf32, #tpu.memory_space<vmem>>, vector<6x32xf32>
    %c0_7 = arith.constant 0 : index
    %c0_8 = arith.constant 0 : index
    %5 = vector.load %arg3[%c0_7, %c0_8] : memref<32x96xf32, #tpu.memory_space<vmem>>, vector<32x96xf32>
    %c0_9 = arith.constant 0 : index
    %c0_10 = arith.constant 0 : index
    %6 = vector.load %arg4[%c0_9, %c0_10] : memref<1x96xf32, #tpu.memory_space<vmem>>, vector<1x96xf32>
    %c0_11 = arith.constant 0 : index
    %c0_12 = arith.constant 0 : index
    %7 = vector.load %arg5[%c0_11, %c0_12] : memref<32x32xf32, #tpu.memory_space<vmem>>, vector<32x32xf32>
    %c0_13 = arith.constant 0 : index
    %c0_14 = arith.constant 0 : index
    %8 = vector.load %arg6[%c0_13, %c0_14] : memref<1x32xf32, #tpu.memory_space<vmem>>, vector<1x32xf32>
    %cst = arith.constant dense<0.000000e+00> : vector<8x96xf32>
    %9 = tpu.matmul %1, %5, %cst {dimension_numbers = #tpu.dot_dimension_numbers<[1], [0], [0], [1], [0, 0, 1, 1], [], []>} : vector<8x32xf32>, vector<32x96xf32>, vector<8x96xf32> -> vector<8x96xf32>
    %10 = vector.broadcast %6 : vector<1x96xf32> to vector<8x96xf32>
    %11 = arith.addf %9, %10 : vector<8x96xf32>
    %12 = vector.extract_strided_slice %11 {offsets = [0, 0], sizes = [8, 32], strides = [1, 1]} : vector<8x96xf32> to vector<8x32xf32>
    %13 = vector.extract_strided_slice %11 {offsets = [0, 32], sizes = [8, 32], strides = [1, 1]} : vector<8x96xf32> to vector<8x32xf32>
    %14 = vector.extract_strided_slice %11 {offsets = [0, 64], sizes = [8, 32], strides = [1, 1]} : vector<8x96xf32> to vector<8x32xf32>
    %15 = vector.extract_strided_slice %12 {offsets = [0, 0], sizes = [8, 8], strides = [1, 1]} : vector<8x32xf32> to vector<8x8xf32>
    %16 = vector.extract_strided_slice %13 {offsets = [0, 0], sizes = [8, 8], strides = [1, 1]} : vector<8x32xf32> to vector<8x8xf32>
    %17 = vector.extract_strided_slice %14 {offsets = [0, 0], sizes = [8, 8], strides = [1, 1]} : vector<8x32xf32> to vector<8x8xf32>
    %cst_15 = arith.constant dense<0.000000e+00> : vector<8x8xf32>
    %18 = tpu.matmul %15, %16, %cst_15 {dimension_numbers = #tpu.dot_dimension_numbers<[1], [1], [0], [0], [0, 0, 1, 0], [], []>} : vector<8x8xf32>, vector<8x8xf32>, vector<8x8xf32> -> vector<8x8xf32>
    %cst_16 = arith.constant dense<0xFF800000> : vector<8xf32>
    %19 = vector.multi_reduction <maximumf>, %18, %cst_16 [1] : vector<8x8xf32> to vector<8xf32>
    %20 = vector.shape_cast %19 : vector<8xf32> to vector<8x1xf32>
    %21 = vector.broadcast %20 : vector<8x1xf32> to vector<8x8xf32>
    %22 = arith.subf %18, %21 : vector<8x8xf32>
    %23 = math.exp %22 : vector<8x8xf32>
    %cst_17 = arith.constant dense<0.000000e+00> : vector<8xf32>
    %24 = vector.multi_reduction <add>, %23, %cst_17 [1] : vector<8x8xf32> to vector<8xf32>
    %25 = vector.shape_cast %24 : vector<8xf32> to vector<8x1xf32>
    %26 = vector.broadcast %25 : vector<8x1xf32> to vector<8x8xf32>
    %27 = arith.divf %23, %26 : vector<8x8xf32>
    %cst_18 = arith.constant dense<0.000000e+00> : vector<8x8xf32>
    %28 = tpu.matmul %27, %17, %cst_18 {dimension_numbers = #tpu.dot_dimension_numbers<[1], [0], [0], [1], [0, 0, 1, 1], [], []>} : vector<8x8xf32>, vector<8x8xf32>, vector<8x8xf32> -> vector<8x8xf32>
    %c0_19 = arith.constant 0 : index
    %c0_20 = arith.constant 0 : index
    %29 = vector.load %arg18[%c0_19, %c0_20] : memref<8x32xf32, #tpu.memory_space<vmem>>, vector<8x8xf32>
    tpu.vector_store %arg18[%c0_19, %c0_20], %28 {strides = array<i32>} : memref<8x32xf32, #tpu.memory_space<vmem>>, vector<8x8xf32>,
    %30 = vector.extract_strided_slice %12 {offsets = [0, 8], sizes = [8, 8], strides = [1, 1]} : vector<8x32xf32> to vector<8x8xf32>
    %31 = vector.extract_strided_slice %13 {offsets = [0, 8], sizes = [8, 8], strides = [1, 1]} : vector<8x32xf32> to vector<8x8xf32>
    %32 = vector.extract_strided_slice %14 {offsets = [0, 8], sizes = [8, 8], strides = [1, 1]} : vector<8x32xf32> to vector<8x8xf32>
    %cst_21 = arith.constant dense<0.000000e+00> : vector<8x8xf32>
    %33 = tpu.matmul %30, %31, %cst_21 {dimension_numbers = #tpu.dot_dimension_numbers<[1], [1], [0], [0], [0, 0, 1, 0], [], []>} : vector<8x8xf32>, vector<8x8xf32>, vector<8x8xf32> -> vector<8x8xf32>
    %cst_22 = arith.constant dense<0xFF800000> : vector<8xf32>
    %34 = vector.multi_reduction <maximumf>, %33, %cst_22 [1] : vector<8x8xf32> to vector<8xf32>
    %35 = vector.shape_cast %34 : vector<8xf32> to vector<8x1xf32>
    %36 = vector.broadcast %35 : vector<8x1xf32> to vector<8x8xf32>
    %37 = arith.subf %33, %36 : vector<8x8xf32>
    %38 = math.exp %37 : vector<8x8xf32>
    %cst_23 = arith.constant dense<0.000000e+00> : vector<8xf32>
    %39 = vector.multi_reduction <add>, %38, %cst_23 [1] : vector<8x8xf32> to vector<8xf32>
    %40 = vector.shape_cast %39 : vector<8xf32> to vector<8x1xf32>
    %41 = vector.broadcast %40 : vector<8x1xf32> to vector<8x8xf32>
    %42 = arith.divf %38, %41 : vector<8x8xf32>
    %cst_24 = arith.constant dense<0.000000e+00> : vector<8x8xf32>
    %43 = tpu.matmul %42, %32, %cst_24 {dimension_numbers = #tpu.dot_dimension_numbers<[1], [0], [0], [1], [0, 0, 1, 1], [], []>} : vector<8x8xf32>, vector<8x8xf32>, vector<8x8xf32> -> vector<8x8xf32>
    %c0_25 = arith.constant 0 : index
    %c8 = arith.constant 8 : index
    %44 = vector.load %arg18[%c0_25, %c8] : memref<8x32xf32, #tpu.memory_space<vmem>>, vector<8x8xf32>
    tpu.vector_store %arg18[%c0_25, %c8], %43 {strides = array<i32>} : memref<8x32xf32, #tpu.memory_space<vmem>>, vector<8x8xf32>,
    %45 = vector.extract_strided_slice %12 {offsets = [0, 16], sizes = [8, 8], strides = [1, 1]} : vector<8x32xf32> to vector<8x8xf32>
    %46 = vector.extract_strided_slice %13 {offsets = [0, 16], sizes = [8, 8], strides = [1, 1]} : vector<8x32xf32> to vector<8x8xf32>
    %47 = vector.extract_strided_slice %14 {offsets = [0, 16], sizes = [8, 8], strides = [1, 1]} : vector<8x32xf32> to vector<8x8xf32>
    %cst_26 = arith.constant dense<0.000000e+00> : vector<8x8xf32>
    %48 = tpu.matmul %45, %46, %cst_26 {dimension_numbers = #tpu.dot_dimension_numbers<[1], [1], [0], [0], [0, 0, 1, 0], [], []>} : vector<8x8xf32>, vector<8x8xf32>, vector<8x8xf32> -> vector<8x8xf32>
    %cst_27 = arith.constant dense<0xFF800000> : vector<8xf32>
    %49 = vector.multi_reduction <maximumf>, %48, %cst_27 [1] : vector<8x8xf32> to vector<8xf32>
    %50 = vector.shape_cast %49 : vector<8xf32> to vector<8x1xf32>
    %51 = vector.broadcast %50 : vector<8x1xf32> to vector<8x8xf32>
    %52 = arith.subf %48, %51 : vector<8x8xf32>
    %53 = math.exp %52 : vector<8x8xf32>
    %cst_28 = arith.constant dense<0.000000e+00> : vector<8xf32>
    %54 = vector.multi_reduction <add>, %53, %cst_28 [1] : vector<8x8xf32> to vector<8xf32>
    %55 = vector.shape_cast %54 : vector<8xf32> to vector<8x1xf32>
    %56 = vector.broadcast %55 : vector<8x1xf32> to vector<8x8xf32>
    %57 = arith.divf %53, %56 : vector<8x8xf32>
    %cst_29 = arith.constant dense<0.000000e+00> : vector<8x8xf32>
    %58 = tpu.matmul %57, %47, %cst_29 {dimension_numbers = #tpu.dot_dimension_numbers<[1], [0], [0], [1], [0, 0, 1, 1], [], []>} : vector<8x8xf32>, vector<8x8xf32>, vector<8x8xf32> -> vector<8x8xf32>
    %c0_30 = arith.constant 0 : index
    %c16 = arith.constant 16 : index
    %59 = vector.load %arg18[%c0_30, %c16] : memref<8x32xf32, #tpu.memory_space<vmem>>, vector<8x8xf32>
    tpu.vector_store %arg18[%c0_30, %c16], %58 {strides = array<i32>} : memref<8x32xf32, #tpu.memory_space<vmem>>, vector<8x8xf32>,
    %60 = vector.extract_strided_slice %12 {offsets = [0, 24], sizes = [8, 8], strides = [1, 1]} : vector<8x32xf32> to vector<8x8xf32>
    %61 = vector.extract_strided_slice %13 {offsets = [0, 24], sizes = [8, 8], strides = [1, 1]} : vector<8x32xf32> to vector<8x8xf32>
    %62 = vector.extract_strided_slice %14 {offsets = [0, 24], sizes = [8, 8], strides = [1, 1]} : vector<8x32xf32> to vector<8x8xf32>
    %cst_31 = arith.constant dense<0.000000e+00> : vector<8x8xf32>
    %63 = tpu.matmul %60, %61, %cst_31 {dimension_numbers = #tpu.dot_dimension_numbers<[1], [1], [0], [0], [0, 0, 1, 0], [], []>} : vector<8x8xf32>, vector<8x8xf32>, vector<8x8xf32> -> vector<8x8xf32>
    %cst_32 = arith.constant dense<0xFF800000> : vector<8xf32>
    %64 = vector.multi_reduction <maximumf>, %63, %cst_32 [1] : vector<8x8xf32> to vector<8xf32>
    %65 = vector.shape_cast %64 : vector<8xf32> to vector<8x1xf32>
    %66 = vector.broadcast %65 : vector<8x1xf32> to vector<8x8xf32>
    %67 = arith.subf %63, %66 : vector<8x8xf32>
    %68 = math.exp %67 : vector<8x8xf32>
    %cst_33 = arith.constant dense<0.000000e+00> : vector<8xf32>
    %69 = vector.multi_reduction <add>, %68, %cst_33 [1] : vector<8x8xf32> to vector<8xf32>
    %70 = vector.shape_cast %69 : vector<8xf32> to vector<8x1xf32>
    %71 = vector.broadcast %70 : vector<8x1xf32> to vector<8x8xf32>
    %72 = arith.divf %68, %71 : vector<8x8xf32>
    %cst_34 = arith.constant dense<0.000000e+00> : vector<8x8xf32>
    %73 = tpu.matmul %72, %62, %cst_34 {dimension_numbers = #tpu.dot_dimension_numbers<[1], [0], [0], [1], [0, 0, 1, 1], [], []>} : vector<8x8xf32>, vector<8x8xf32>, vector<8x8xf32> -> vector<8x8xf32>
    %c0_35 = arith.constant 0 : index
    %c24 = arith.constant 24 : index
    %74 = vector.load %arg18[%c0_35, %c24] : memref<8x32xf32, #tpu.memory_space<vmem>>, vector<8x8xf32>
    tpu.vector_store %arg18[%c0_35, %c24], %73 {strides = array<i32>} : memref<8x32xf32, #tpu.memory_space<vmem>>, vector<8x8xf32>,
    %c0_36 = arith.constant 0 : index
    %c0_37 = arith.constant 0 : index
    %75 = vector.load %arg18[%c0_36, %c0_37] : memref<8x32xf32, #tpu.memory_space<vmem>>, vector<8x32xf32>
    %cst_38 = arith.constant dense<0.000000e+00> : vector<8x32xf32>
    %76 = tpu.matmul %75, %7, %cst_38 {dimension_numbers = #tpu.dot_dimension_numbers<[1], [0], [0], [1], [0, 0, 1, 1], [], []>} : vector<8x32xf32>, vector<32x32xf32>, vector<8x32xf32> -> vector<8x32xf32>
    %77 = vector.broadcast %8 : vector<1x32xf32> to vector<8x32xf32>
    %78 = arith.addf %76, %77 : vector<8x32xf32>
    %79 = arith.addf %1, %78 : vector<8x32xf32>
    %80 = vector.extract_strided_slice %4 {offsets = [0, 0], sizes = [1, 32], strides = [1, 1]} : vector<6x32xf32> to vector<1x32xf32>
    %81 = vector.extract_strided_slice %4 {offsets = [1, 0], sizes = [1, 32], strides = [1, 1]} : vector<6x32xf32> to vector<1x32xf32>
    %cst_39 = arith.constant dense<0.000000e+00> : vector<8xf32>
    %82 = vector.multi_reduction <add>, %79, %cst_39 [1] : vector<8x32xf32> to vector<8xf32>
    %83 = vector.shape_cast %82 : vector<8xf32> to vector<8x1xf32>
    %cst_40 = arith.constant 3.200000e+01 : f32
    %84 = vector.broadcast %cst_40 : f32 to vector<8x1xf32>
    %85 = arith.divf %83, %84 : vector<8x1xf32>
    %86 = vector.broadcast %85 : vector<8x1xf32> to vector<8x32xf32>
    %87 = arith.subf %79, %86 : vector<8x32xf32>
    %88 = arith.mulf %87, %87 : vector<8x32xf32>
    %cst_41 = arith.constant dense<0.000000e+00> : vector<8xf32>
    %89 = vector.multi_reduction <add>, %88, %cst_41 [1] : vector<8x32xf32> to vector<8xf32>
    %90 = vector.shape_cast %89 : vector<8xf32> to vector<8x1xf32>
    %cst_42 = arith.constant 3.200000e+01 : f32
    %91 = vector.broadcast %cst_42 : f32 to vector<8x1xf32>
    %92 = arith.divf %90, %91 : vector<8x1xf32>
    %cst_43 = arith.constant 9.99999996E-13 : f32
    %93 = vector.broadcast %cst_43 : f32 to vector<8x1xf32>
    %94 = arith.addf %92, %93 : vector<8x1xf32>
    %95 = math.rsqrt %94 : vector<8x1xf32>
    %96 = vector.broadcast %95 : vector<8x1xf32> to vector<8x32xf32>
    %97 = arith.mulf %87, %96 : vector<8x32xf32>
    %98 = vector.broadcast %80 : vector<1x32xf32> to vector<8x32xf32>
    %99 = arith.mulf %97, %98 : vector<8x32xf32>
    %100 = vector.broadcast %81 : vector<1x32xf32> to vector<8x32xf32>
    %101 = arith.addf %99, %100 : vector<8x32xf32>
    %c0_44 = arith.constant 0 : index
    %c0_45 = arith.constant 0 : index
    %102 = vector.load %arg7[%c0_44, %c0_45] : memref<32x96xf32, #tpu.memory_space<vmem>>, vector<32x96xf32>
    %c0_46 = arith.constant 0 : index
    %c0_47 = arith.constant 0 : index
    %103 = vector.load %arg8[%c0_46, %c0_47] : memref<1x96xf32, #tpu.memory_space<vmem>>, vector<1x96xf32>
    %c0_48 = arith.constant 0 : index
    %c0_49 = arith.constant 0 : index
    %104 = vector.load %arg9[%c0_48, %c0_49] : memref<32x32xf32, #tpu.memory_space<vmem>>, vector<32x32xf32>
    %c0_50 = arith.constant 0 : index
    %c0_51 = arith.constant 0 : index
    %105 = vector.load %arg10[%c0_50, %c0_51] : memref<1x32xf32, #tpu.memory_space<vmem>>, vector<1x32xf32>
    %106 = vector.extract_strided_slice %102 {offsets = [0, 0], sizes = [32, 32], strides = [1, 1]} : vector<32x96xf32> to vector<32x32xf32>
    %cst_52 = arith.constant dense<0.000000e+00> : vector<8x32xf32>
    %107 = tpu.matmul %101, %106, %cst_52 {dimension_numbers = #tpu.dot_dimension_numbers<[1], [0], [0], [1], [0, 0, 1, 1], [], []>} : vector<8x32xf32>, vector<32x32xf32>, vector<8x32xf32> -> vector<8x32xf32>
    %108 = vector.extract_strided_slice %103 {offsets = [0, 0], sizes = [1, 32], strides = [1, 1]} : vector<1x96xf32> to vector<1x32xf32>
    %109 = vector.broadcast %108 : vector<1x32xf32> to vector<8x32xf32>
    %110 = arith.addf %107, %109 : vector<8x32xf32>
    %111 = vector.extract_strided_slice %102 {offsets = [0, 32], sizes = [32, 64], strides = [1, 1]} : vector<32x96xf32> to vector<32x64xf32>
    %cst_53 = arith.constant dense<0.000000e+00> : vector<12x64xf32>
    %112 = tpu.matmul %3, %111, %cst_53 {dimension_numbers = #tpu.dot_dimension_numbers<[1], [0], [0], [1], [0, 0, 1, 1], [], []>} : vector<12x32xf32>, vector<32x64xf32>, vector<12x64xf32> -> vector<12x64xf32>
    %113 = vector.extract_strided_slice %103 {offsets = [0, 32], sizes = [1, 64], strides = [1, 1]} : vector<1x96xf32> to vector<1x64xf32>
    %114 = vector.broadcast %113 : vector<1x64xf32> to vector<12x64xf32>
    %115 = arith.addf %112, %114 : vector<12x64xf32>
    %116 = vector.extract_strided_slice %115 {offsets = [0, 0], sizes = [12, 32], strides = [1, 1]} : vector<12x64xf32> to vector<12x32xf32>
    %117 = vector.extract_strided_slice %115 {offsets = [0, 32], sizes = [12, 32], strides = [1, 1]} : vector<12x64xf32> to vector<12x32xf32>
    %118 = vector.extract_strided_slice %110 {offsets = [0, 0], sizes = [8, 8], strides = [1, 1]} : vector<8x32xf32> to vector<8x8xf32>
    %119 = vector.extract_strided_slice %116 {offsets = [0, 0], sizes = [12, 8], strides = [1, 1]} : vector<12x32xf32> to vector<12x8xf32>
    %120 = vector.extract_strided_slice %117 {offsets = [0, 0], sizes = [12, 8], strides = [1, 1]} : vector<12x32xf32> to vector<12x8xf32>
    %cst_54 = arith.constant dense<0.000000e+00> : vector<8x12xf32>
    %121 = tpu.matmul %118, %119, %cst_54 {dimension_numbers = #tpu.dot_dimension_numbers<[1], [1], [0], [0], [0, 0, 1, 0], [], []>} : vector<8x8xf32>, vector<12x8xf32>, vector<8x12xf32> -> vector<8x12xf32>
    %cst_55 = arith.constant dense<0xFF800000> : vector<8xf32>
    %122 = vector.multi_reduction <maximumf>, %121, %cst_55 [1] : vector<8x12xf32> to vector<8xf32>
    %123 = vector.shape_cast %122 : vector<8xf32> to vector<8x1xf32>
    %124 = vector.broadcast %123 : vector<8x1xf32> to vector<8x12xf32>
    %125 = arith.subf %121, %124 : vector<8x12xf32>
    %126 = math.exp %125 : vector<8x12xf32>
    %cst_56 = arith.constant dense<0.000000e+00> : vector<8xf32>
    %127 = vector.multi_reduction <add>, %126, %cst_56 [1] : vector<8x12xf32> to vector<8xf32>
    %128 = vector.shape_cast %127 : vector<8xf32> to vector<8x1xf32>
    %129 = vector.broadcast %128 : vector<8x1xf32> to vector<8x12xf32>
    %130 = arith.divf %126, %129 : vector<8x12xf32>
    %cst_57 = arith.constant dense<0.000000e+00> : vector<8x8xf32>
    %131 = tpu.matmul %130, %120, %cst_57 {dimension_numbers = #tpu.dot_dimension_numbers<[1], [0], [0], [1], [0, 0, 1, 1], [], []>} : vector<8x12xf32>, vector<12x8xf32>, vector<8x8xf32> -> vector<8x8xf32>
    %c0_58 = arith.constant 0 : index
    %c0_59 = arith.constant 0 : index
    %132 = vector.load %arg18[%c0_58, %c0_59] : memref<8x32xf32, #tpu.memory_space<vmem>>, vector<8x8xf32>
    tpu.vector_store %arg18[%c0_58, %c0_59], %131 {strides = array<i32>} : memref<8x32xf32, #tpu.memory_space<vmem>>, vector<8x8xf32>,
    %133 = vector.extract_strided_slice %110 {offsets = [0, 8], sizes = [8, 8], strides = [1, 1]} : vector<8x32xf32> to vector<8x8xf32>
    %134 = vector.extract_strided_slice %116 {offsets = [0, 8], sizes = [12, 8], strides = [1, 1]} : vector<12x32xf32> to vector<12x8xf32>
    %135 = vector.extract_strided_slice %117 {offsets = [0, 8], sizes = [12, 8], strides = [1, 1]} : vector<12x32xf32> to vector<12x8xf32>
    %cst_60 = arith.constant dense<0.000000e+00> : vector<8x12xf32>
    %136 = tpu.matmul %133, %134, %cst_60 {dimension_numbers = #tpu.dot_dimension_numbers<[1], [1], [0], [0], [0, 0, 1, 0], [], []>} : vector<8x8xf32>, vector<12x8xf32>, vector<8x12xf32> -> vector<8x12xf32>
    %cst_61 = arith.constant dense<0xFF800000> : vector<8xf32>
    %137 = vector.multi_reduction <maximumf>, %136, %cst_61 [1] : vector<8x12xf32> to vector<8xf32>
    %138 = vector.shape_cast %137 : vector<8xf32> to vector<8x1xf32>
    %139 = vector.broadcast %138 : vector<8x1xf32> to vector<8x12xf32>
    %140 = arith.subf %136, %139 : vector<8x12xf32>
    %141 = math.exp %140 : vector<8x12xf32>
    %cst_62 = arith.constant dense<0.000000e+00> : vector<8xf32>
    %142 = vector.multi_reduction <add>, %141, %cst_62 [1] : vector<8x12xf32> to vector<8xf32>
    %143 = vector.shape_cast %142 : vector<8xf32> to vector<8x1xf32>
    %144 = vector.broadcast %143 : vector<8x1xf32> to vector<8x12xf32>
    %145 = arith.divf %141, %144 : vector<8x12xf32>
    %cst_63 = arith.constant dense<0.000000e+00> : vector<8x8xf32>
    %146 = tpu.matmul %145, %135, %cst_63 {dimension_numbers = #tpu.dot_dimension_numbers<[1], [0], [0], [1], [0, 0, 1, 1], [], []>} : vector<8x12xf32>, vector<12x8xf32>, vector<8x8xf32> -> vector<8x8xf32>
    %c0_64 = arith.constant 0 : index
    %c8_65 = arith.constant 8 : index
    %147 = vector.load %arg18[%c0_64, %c8_65] : memref<8x32xf32, #tpu.memory_space<vmem>>, vector<8x8xf32>
    tpu.vector_store %arg18[%c0_64, %c8_65], %146 {strides = array<i32>} : memref<8x32xf32, #tpu.memory_space<vmem>>, vector<8x8xf32>,
    %148 = arith.addf %130, %145 : vector<8x12xf32>
    %149 = vector.extract_strided_slice %110 {offsets = [0, 16], sizes = [8, 8], strides = [1, 1]} : vector<8x32xf32> to vector<8x8xf32>
    %150 = vector.extract_strided_slice %116 {offsets = [0, 16], sizes = [12, 8], strides = [1, 1]} : vector<12x32xf32> to vector<12x8xf32>
    %151 = vector.extract_strided_slice %117 {offsets = [0, 16], sizes = [12, 8], strides = [1, 1]} : vector<12x32xf32> to vector<12x8xf32>
    %cst_66 = arith.constant dense<0.000000e+00> : vector<8x12xf32>
    %152 = tpu.matmul %149, %150, %cst_66 {dimension_numbers = #tpu.dot_dimension_numbers<[1], [1], [0], [0], [0, 0, 1, 0], [], []>} : vector<8x8xf32>, vector<12x8xf32>, vector<8x12xf32> -> vector<8x12xf32>
    %cst_67 = arith.constant dense<0xFF800000> : vector<8xf32>
    %153 = vector.multi_reduction <maximumf>, %152, %cst_67 [1] : vector<8x12xf32> to vector<8xf32>
    %154 = vector.shape_cast %153 : vector<8xf32> to vector<8x1xf32>
    %155 = vector.broadcast %154 : vector<8x1xf32> to vector<8x12xf32>
    %156 = arith.subf %152, %155 : vector<8x12xf32>
    %157 = math.exp %156 : vector<8x12xf32>
    %cst_68 = arith.constant dense<0.000000e+00> : vector<8xf32>
    %158 = vector.multi_reduction <add>, %157, %cst_68 [1] : vector<8x12xf32> to vector<8xf32>
    %159 = vector.shape_cast %158 : vector<8xf32> to vector<8x1xf32>
    %160 = vector.broadcast %159 : vector<8x1xf32> to vector<8x12xf32>
    %161 = arith.divf %157, %160 : vector<8x12xf32>
    %cst_69 = arith.constant dense<0.000000e+00> : vector<8x8xf32>
    %162 = tpu.matmul %161, %151, %cst_69 {dimension_numbers = #tpu.dot_dimension_numbers<[1], [0], [0], [1], [0, 0, 1, 1], [], []>} : vector<8x12xf32>, vector<12x8xf32>, vector<8x8xf32> -> vector<8x8xf32>
    %c0_70 = arith.constant 0 : index
    %c16_71 = arith.constant 16 : index
    %163 = vector.load %arg18[%c0_70, %c16_71] : memref<8x32xf32, #tpu.memory_space<vmem>>, vector<8x8xf32>
    tpu.vector_store %arg18[%c0_70, %c16_71], %162 {strides = array<i32>} : memref<8x32xf32, #tpu.memory_space<vmem>>, vector<8x8xf32>,
    %164 = arith.addf %148, %161 : vector<8x12xf32>
    %165 = vector.extract_strided_slice %110 {offsets = [0, 24], sizes = [8, 8], strides = [1, 1]} : vector<8x32xf32> to vector<8x8xf32>
    %166 = vector.extract_strided_slice %116 {offsets = [0, 24], sizes = [12, 8], strides = [1, 1]} : vector<12x32xf32> to vector<12x8xf32>
    %167 = vector.extract_strided_slice %117 {offsets = [0, 24], sizes = [12, 8], strides = [1, 1]} : vector<12x32xf32> to vector<12x8xf32>
    %cst_72 = arith.constant dense<0.000000e+00> : vector<8x12xf32>
    %168 = tpu.matmul %165, %166, %cst_72 {dimension_numbers = #tpu.dot_dimension_numbers<[1], [1], [0], [0], [0, 0, 1, 0], [], []>} : vector<8x8xf32>, vector<12x8xf32>, vector<8x12xf32> -> vector<8x12xf32>
    %cst_73 = arith.constant dense<0xFF800000> : vector<8xf32>
    %169 = vector.multi_reduction <maximumf>, %168, %cst_73 [1] : vector<8x12xf32> to vector<8xf32>
    %170 = vector.shape_cast %169 : vector<8xf32> to vector<8x1xf32>
    %171 = vector.broadcast %170 : vector<8x1xf32> to vector<8x12xf32>
    %172 = arith.subf %168, %171 : vector<8x12xf32>
    %173 = math.exp %172 : vector<8x12xf32>
    %cst_74 = arith.constant dense<0.000000e+00> : vector<8xf32>
    %174 = vector.multi_reduction <add>, %173, %cst_74 [1] : vector<8x12xf32> to vector<8xf32>
    %175 = vector.shape_cast %174 : vector<8xf32> to vector<8x1xf32>
    %176 = vector.broadcast %175 : vector<8x1xf32> to vector<8x12xf32>
    %177 = arith.divf %173, %176 : vector<8x12xf32>
    %cst_75 = arith.constant dense<0.000000e+00> : vector<8x8xf32>
    %178 = tpu.matmul %177, %167, %cst_75 {dimension_numbers = #tpu.dot_dimension_numbers<[1], [0], [0], [1], [0, 0, 1, 1], [], []>} : vector<8x12xf32>, vector<12x8xf32>, vector<8x8xf32> -> vector<8x8xf32>
    %c0_76 = arith.constant 0 : index
    %c24_77 = arith.constant 24 : index
    %179 = vector.load %arg18[%c0_76, %c24_77] : memref<8x32xf32, #tpu.memory_space<vmem>>, vector<8x8xf32>
    tpu.vector_store %arg18[%c0_76, %c24_77], %178 {strides = array<i32>} : memref<8x32xf32, #tpu.memory_space<vmem>>, vector<8x8xf32>,
    %180 = arith.addf %164, %177 : vector<8x12xf32>
    %c0_78 = arith.constant 0 : index
    %c0_79 = arith.constant 0 : index
    %181 = vector.load %arg18[%c0_78, %c0_79] : memref<8x32xf32, #tpu.memory_space<vmem>>, vector<8x32xf32>
    %cst_80 = arith.constant dense<0.000000e+00> : vector<8x32xf32>
    %182 = tpu.matmul %181, %104, %cst_80 {dimension_numbers = #tpu.dot_dimension_numbers<[1], [0], [0], [1], [0, 0, 1, 1], [], []>} : vector<8x32xf32>, vector<32x32xf32>, vector<8x32xf32> -> vector<8x32xf32>
    %183 = vector.broadcast %105 : vector<1x32xf32> to vector<8x32xf32>
    %184 = arith.addf %182, %183 : vector<8x32xf32>
    %cst_81 = arith.constant 2.500000e-01 : f32
    %185 = vector.broadcast %cst_81 : f32 to vector<8x12xf32>
    %186 = arith.mulf %180, %185 : vector<8x12xf32>
    %c0_82 = arith.constant 0 : index
    %c0_83 = arith.constant 0 : index
    %c0_84 = arith.constant 0 : index
    %187 = vector.load %arg17[%c0_82, %c0_83, %c0_84] : memref<1x8x12xf32, #tpu.memory_space<vmem>>, vector<1x8x12xf32>
    %188 = vector.shape_cast %187 : vector<1x8x12xf32> to vector<8x12xf32>
    %189 = vector.shape_cast %186 : vector<8x12xf32> to vector<1x8x12xf32>
    tpu.vector_store %arg17[%c0_82, %c0_83, %c0_84], %189 {strides = array<i32>} : memref<1x8x12xf32, #tpu.memory_space<vmem>>, vector<1x8x12xf32>,
    %190 = arith.addf %101, %184 : vector<8x32xf32>
    %191 = vector.extract_strided_slice %4 {offsets = [2, 0], sizes = [1, 32], strides = [1, 1]} : vector<6x32xf32> to vector<1x32xf32>
    %192 = vector.extract_strided_slice %4 {offsets = [3, 0], sizes = [1, 32], strides = [1, 1]} : vector<6x32xf32> to vector<1x32xf32>
    %cst_85 = arith.constant dense<0.000000e+00> : vector<8xf32>
    %193 = vector.multi_reduction <add>, %190, %cst_85 [1] : vector<8x32xf32> to vector<8xf32>
    %194 = vector.shape_cast %193 : vector<8xf32> to vector<8x1xf32>
    %cst_86 = arith.constant 3.200000e+01 : f32
    %195 = vector.broadcast %cst_86 : f32 to vector<8x1xf32>
    %196 = arith.divf %194, %195 : vector<8x1xf32>
    %197 = vector.broadcast %196 : vector<8x1xf32> to vector<8x32xf32>
    %198 = arith.subf %190, %197 : vector<8x32xf32>
    %199 = arith.mulf %198, %198 : vector<8x32xf32>
    %cst_87 = arith.constant dense<0.000000e+00> : vector<8xf32>
    %200 = vector.multi_reduction <add>, %199, %cst_87 [1] : vector<8x32xf32> to vector<8xf32>
    %201 = vector.shape_cast %200 : vector<8xf32> to vector<8x1xf32>
    %cst_88 = arith.constant 3.200000e+01 : f32
    %202 = vector.broadcast %cst_88 : f32 to vector<8x1xf32>
    %203 = arith.divf %201, %202 : vector<8x1xf32>
    %cst_89 = arith.constant 9.99999996E-13 : f32
    %204 = vector.broadcast %cst_89 : f32 to vector<8x1xf32>
    %205 = arith.addf %203, %204 : vector<8x1xf32>
    %206 = math.rsqrt %205 : vector<8x1xf32>
    %207 = vector.broadcast %206 : vector<8x1xf32> to vector<8x32xf32>
    %208 = arith.mulf %198, %207 : vector<8x32xf32>
    %209 = vector.broadcast %191 : vector<1x32xf32> to vector<8x32xf32>
    %210 = arith.mulf %208, %209 : vector<8x32xf32>
    %211 = vector.broadcast %192 : vector<1x32xf32> to vector<8x32xf32>
    %212 = arith.addf %210, %211 : vector<8x32xf32>
    %c0_90 = arith.constant 0 : index
    %c0_91 = arith.constant 0 : index
    %213 = vector.load %arg11[%c0_90, %c0_91] : memref<32x64xf32, #tpu.memory_space<vmem>>, vector<32x64xf32>
    %cst_92 = arith.constant dense<0.000000e+00> : vector<8x64xf32>
    %214 = tpu.matmul %212, %213, %cst_92 {dimension_numbers = #tpu.dot_dimension_numbers<[1], [0], [0], [1], [0, 0, 1, 1], [], []>} : vector<8x32xf32>, vector<32x64xf32>, vector<8x64xf32> -> vector<8x64xf32>
    %c0_93 = arith.constant 0 : index
    %c0_94 = arith.constant 0 : index
    %215 = vector.load %arg12[%c0_93, %c0_94] : memref<1x64xf32, #tpu.memory_space<vmem>>, vector<1x64xf32>
    %216 = vector.broadcast %215 : vector<1x64xf32> to vector<8x64xf32>
    %217 = arith.addf %214, %216 : vector<8x64xf32>
    %cst_95 = arith.constant 5.000000e-01 : f32
    %218 = vector.broadcast %cst_95 : f32 to vector<8x64xf32>
    %219 = arith.mulf %218, %217 : vector<8x64xf32>
    %cst_96 = arith.constant 0.707106769 : f32
    %220 = vector.broadcast %cst_96 : f32 to vector<8x64xf32>
    %221 = arith.mulf %217, %220 : vector<8x64xf32>
    %222 = math.erf %221 : vector<8x64xf32>
    %cst_97 = arith.constant 1.000000e+00 : f32
    %223 = vector.broadcast %cst_97 : f32 to vector<8x64xf32>
    %224 = arith.addf %223, %222 : vector<8x64xf32>
    %225 = arith.mulf %219, %224 : vector<8x64xf32>
    %c0_98 = arith.constant 0 : index
    %c0_99 = arith.constant 0 : index
    %226 = vector.load %arg13[%c0_98, %c0_99] : memref<64x32xf32, #tpu.memory_space<vmem>>, vector<64x32xf32>
    %cst_100 = arith.constant dense<0.000000e+00> : vector<8x32xf32>
    %227 = tpu.matmul %225, %226, %cst_100 {dimension_numbers = #tpu.dot_dimension_numbers<[1], [0], [0], [1], [0, 0, 1, 1], [], []>} : vector<8x64xf32>, vector<64x32xf32>, vector<8x32xf32> -> vector<8x32xf32>
    %c0_101 = arith.constant 0 : index
    %c0_102 = arith.constant 0 : index
    %228 = vector.load %arg14[%c0_101, %c0_102] : memref<1x32xf32, #tpu.memory_space<vmem>>, vector<1x32xf32>
    %229 = vector.broadcast %228 : vector<1x32xf32> to vector<8x32xf32>
    %230 = arith.addf %227, %229 : vector<8x32xf32>
    %231 = arith.addf %212, %230 : vector<8x32xf32>
    %232 = vector.extract_strided_slice %4 {offsets = [4, 0], sizes = [1, 32], strides = [1, 1]} : vector<6x32xf32> to vector<1x32xf32>
    %233 = vector.extract_strided_slice %4 {offsets = [5, 0], sizes = [1, 32], strides = [1, 1]} : vector<6x32xf32> to vector<1x32xf32>
    %cst_103 = arith.constant dense<0.000000e+00> : vector<8xf32>
    %234 = vector.multi_reduction <add>, %231, %cst_103 [1] : vector<8x32xf32> to vector<8xf32>
    %235 = vector.shape_cast %234 : vector<8xf32> to vector<8x1xf32>
    %cst_104 = arith.constant 3.200000e+01 : f32
    %236 = vector.broadcast %cst_104 : f32 to vector<8x1xf32>
    %237 = arith.divf %235, %236 : vector<8x1xf32>
    %238 = vector.broadcast %237 : vector<8x1xf32> to vector<8x32xf32>
    %239 = arith.subf %231, %238 : vector<8x32xf32>
    %240 = arith.mulf %239, %239 : vector<8x32xf32>
    %cst_105 = arith.constant dense<0.000000e+00> : vector<8xf32>
    %241 = vector.multi_reduction <add>, %240, %cst_105 [1] : vector<8x32xf32> to vector<8xf32>
    %242 = vector.shape_cast %241 : vector<8xf32> to vector<8x1xf32>
    %cst_106 = arith.constant 3.200000e+01 : f32
    %243 = vector.broadcast %cst_106 : f32 to vector<8x1xf32>
    %244 = arith.divf %242, %243 : vector<8x1xf32>
    %cst_107 = arith.constant 9.99999996E-13 : f32
    %245 = vector.broadcast %cst_107 : f32 to vector<8x1xf32>
    %246 = arith.addf %244, %245 : vector<8x1xf32>
    %247 = math.rsqrt %246 : vector<8x1xf32>
    %248 = vector.broadcast %247 : vector<8x1xf32> to vector<8x32xf32>
    %249 = arith.mulf %239, %248 : vector<8x32xf32>
    %250 = vector.broadcast %232 : vector<1x32xf32> to vector<8x32xf32>
    %251 = arith.mulf %249, %250 : vector<8x32xf32>
    %252 = vector.broadcast %233 : vector<1x32xf32> to vector<8x32xf32>
    %253 = arith.addf %251, %252 : vector<8x32xf32>
    %c0_108 = arith.constant 0 : index
    %c0_109 = arith.constant 0 : index
    %c0_110 = arith.constant 0 : index
    %254 = vector.load %arg16[%c0_108, %c0_109, %c0_110] : memref<1x8x32xf32, #tpu.memory_space<vmem>>, vector<1x8x32xf32>
    %255 = vector.shape_cast %254 : vector<1x8x32xf32> to vector<8x32xf32>
    %256 = vector.shape_cast %253 : vector<8x32xf32> to vector<1x8x32xf32>
    tpu.vector_store %arg16[%c0_108, %c0_109, %c0_110], %256 {strides = array<i32>} : memref<1x8x32xf32, #tpu.memory_space<vmem>>, vector<1x8x32xf32>,
    return
  }
  func.func @transform_0(%arg0: i32) -> (i32, i32, i32) {
    %c0_i32 = arith.constant 0 : i32
    %c0_i32_0 = arith.constant 0 : i32
    %c0_i32_1 = arith.constant 0 : i32
    return %arg0, %c0_i32, %c0_i32_0 : i32, i32, i32
  }
  func.func @transform_1(%arg0: i32) -> (i32, i32, i32) {
    %c0_i32 = arith.constant 0 : i32
    %c0_i32_0 = arith.constant 0 : i32
    %c0_i32_1 = arith.constant 0 : i32
    return %arg0, %c0_i32, %c0_i32_0 : i32, i32, i32
  }
  func.func @transform_2(%arg0: i32) -> (i32, i32) {
    %c0_i32 = arith.constant 0 : i32
    %c0_i32_0 = arith.constant 0 : i32
    %c0_i32_1 = arith.constant 0 : i32
    return %c0_i32, %c0_i32_0 : i32, i32
  }
  func.func @transform_3(%arg0: i32) -> (i32, i32) {
    %c0_i32 = arith.constant 0 : i32
    %c0_i32_0 = arith.constant 0 : i32
    %c0_i32_1 = arith.constant 0 : i32
    return %c0_i32, %c0_i32_0 : i32, i32
  }
  func.func @transform_4(%arg0: i32) -> (i32, i32) {
    %c0_i32 = arith.constant 0 : i32
    %c0_i32_0 = arith.constant 0 : i32
    %c0_i32_1 = arith.constant 0 : i32
    return %c0_i32, %c0_i32_0 : i32, i32
  }
  func.func @transform_5(%arg0: i32) -> (i32, i32) {
    %c0_i32 = arith.constant 0 : i32
    %c0_i32_0 = arith.constant 0 : i32
    %c0_i32_1 = arith.constant 0 : i32
    return %c0_i32, %c0_i32_0 : i32, i32
  }
  func.func @transform_6(%arg0: i32) -> (i32, i32) {
    %c0_i32 = arith.constant 0 : i32
    %c0_i32_0 = arith.constant 0 : i32
    %c0_i32_1 = arith.constant 0 : i32
    return %c0_i32, %c0_i32_0 : i32, i32
  }
  func.func @transform_7(%arg0: i32) -> (i32, i32) {
    %c0_i32 = arith.constant 0 : i32
    %c0_i32_0 = arith.constant 0 : i32
    %c0_i32_1 = arith.constant 0 : i32
    return %c0_i32, %c0_i32_0 : i32, i32
  }
  func.func @transform_8(%arg0: i32) -> (i32, i32) {
    %c0_i32 = arith.constant 0 : i32
    %c0_i32_0 = arith.constant 0 : i32
    %c0_i32_1 = arith.constant 0 : i32
    return %c0_i32, %c0_i32_0 : i32, i32
  }
  func.func @transform_9(%arg0: i32) -> (i32, i32) {
    %c0_i32 = arith.constant 0 : i32
    %c0_i32_0 = arith.constant 0 : i32
    %c0_i32_1 = arith.constant 0 : i32
    return %c0_i32, %c0_i32_0 : i32, i32
  }
  func.func @transform_10(%arg0: i32) -> (i32, i32) {
    %c0_i32 = arith.constant 0 : i32
    %c0_i32_0 = arith.constant 0 : i32
    %c0_i32_1 = arith.constant 0 : i32
    return %c0_i32, %c0_i32_0 : i32, i32
  }
  func.func @transform_11(%arg0: i32) -> (i32, i32) {
    %c0_i32 = arith.constant 0 : i32
    %c0_i32_0 = arith.constant 0 : i32
    %c0_i32_1 = arith.constant 0 : i32
    return %c0_i32, %c0_i32_0 : i32, i32
  }
  func.func @transform_12(%arg0: i32) -> (i32, i32) {
    %c0_i32 = arith.constant 0 : i32
    %c0_i32_0 = arith.constant 0 : i32
    %c0_i32_1 = arith.constant 0 : i32
    return %c0_i32, %c0_i32_0 : i32, i32
  }
  func.func @transform_13(%arg0: i32) -> (i32, i32) {
    %c0_i32 = arith.constant 0 : i32
    %c0_i32_0 = arith.constant 0 : i32
    %c0_i32_1 = arith.constant 0 : i32
    return %c0_i32, %c0_i32_0 : i32, i32
  }
  func.func @transform_14(%arg0: i32) -> (i32, i32) {
    %c0_i32 = arith.constant 0 : i32
    %c0_i32_0 = arith.constant 0 : i32
    %c0_i32_1 = arith.constant 0 : i32
    return %c0_i32, %c0_i32_0 : i32, i32
  }
  func.func @transform_15(%arg0: i32) -> (i32, i32, i32) {
    %c0_i32 = arith.constant 0 : i32
    %c0_i32_0 = arith.constant 0 : i32
    %c0_i32_1 = arith.constant 0 : i32
    return %arg0, %c0_i32, %c0_i32_0 : i32, i32, i32
  }
  func.func @transform_16(%arg0: i32) -> (i32, i32, i32) {
    %c0_i32 = arith.constant 0 : i32
    %c0_i32_0 = arith.constant 0 : i32
    %c0_i32_1 = arith.constant 0 : i32
    return %arg0, %c0_i32, %c0_i32_0 : i32, i32, i32
  }
}

</mosaic_0001>

<bundles_post_ra>
// kernel: transformer_decoder_forward.1
= control target key start
LH: loop header
LB: loop body
LE: loop exit
PB: predicated region body
PF: predicated region fallthrough
CT: control target
= control target key end

     0   :  { %s2919_s0 = inlined_call_operand.vmem [shape: f32[2,8,32], index: 0, kind: input, shape index: {}]   ;;  %s2920_s1 = inlined_call_operand.vmem [shape: f32[2,12,32], index: 1, kind: input, shape index: {}]   ;;  %s2921_s2 = inlined_call_operand.vmem [shape: f32[32,96], index: 2, kind: input, shape index: {}]   ;;  %s2922_s3 = inlined_call_operand.hbm [shape: f32[1,96], index: 3, kind: input, shape index: {}]   ;;  %s2923_s4 = inlined_call_operand.vmem [shape: f32[32,32], index: 4, kind: input, shape index: {}]   ;;  %s2924_s5 = inlined_call_operand.hbm [shape: f32[1,32], index: 5, kind: input, shape index: {}]   ;;  %s2925_s6 = inlined_call_operand.vmem [shape: f32[32,96], index: 6, kind: input, shape index: {}]   ;;  %s2926_s7 = inlined_call_operand.hbm [shape: f32[1,96], index: 7, kind: input, shape index: {}]   ;;  %s2927_s8 = inlined_call_operand.vmem [shape: f32[32,32], index: 8, kind: input, shape index: {}]   ;;  %s2928_s9 = inlined_call_operand.hbm [shape: f32[1,32], index: 9, kind: input, shape index: {}]   ;;  %s2929_s10 = inlined_call_operand.hbm [shape: f32[32,64], index: 10, kind: input, shape index: {}]   ;;  %s2930_s11 = inlined_call_operand.hbm [shape: f32[1,64], index: 11, kind: input, shape index: {}]   ;;  %s2931_s12 = inlined_call_operand.vmem [shape: f32[64,32], index: 12, kind: input, shape index: {}]   ;;  %s2932_s13 = inlined_call_operand.vmem [shape: f32[1,32], index: 13, kind: input, shape index: {}]   ;;  %s2933_s14 = inlined_call_operand.vmem [shape: f32[6,32], index: 14, kind: input, shape index: {}]   ;;  %s2934_s15 = inlined_call_operand.vmem [shape: f32[2,8,32], index: 15, kind: output, shape index: {0}]   ;;  %s2935_s16 = inlined_call_operand.hbm [shape: f32[2,8,12], index: 16, kind: output, shape index: {1}]  }
   0x1   :  { %2946 = sst [smem:[#allocation26_spill]] %s2919_s0 }
   0x2   :  { %2947 = sst [smem:[#allocation27_spill]] %s2922_s3 }
   0x3   :  { %2948 = sst [smem:[#allocation28_spill]] %s2924_s5 }
   0x4   :  { %2949 = sst [smem:[#allocation29_spill]] %s2928_s9 }
   0x5   :  { %2950 = sst [smem:[#allocation30_spill]] %s2934_s15 }
   0x6   :  { %22 = vsyncpa [#allocation4], 0 }
   0x7   :  { %23 = vsyncpa [#allocation7], 0 }
   0x8   :  { %24 = vsyncpa [#allocation10], 0 }
   0x9   :  { %25 = vsyncpa [#allocation13], 0 }
   0xa   :  { %26 = vsyncpa [#allocation5], 0 }
   0xb   :  { %28 = vsyncpa [#allocation5 + $0x1], 0  ;;  %s2500_s21 = smov 0   ;;  %s2502_s22 = smov 0  }
   0xc   :  { %s2504_s23 = smov 0   ;;  %s2506_s24 = smov 0  }
   0xd LB: > { %2951 = sst [smem:[#allocation20_spill]] %s2378_s21  ;;  %s2521_s25 = sadd.s32 4294967295, %s2390_s24   ;;  %s2390_s24 = sphi %s2506_s24, %s2973_s24   ;;  %s2386_s23 = sphi %s2504_s23, %s2975_s23   ;;  %s2382_s22 = sphi %s2502_s22, %s2977_s22   ;;  %s2378_s21 = sphi %s2500_s21, %s2976_s21  }
   0xe   : > { %2952 = sst [smem:[#allocation21_spill]] %s2386_s23  ;;  %s1890_s26 = sadd.s32 4294967294, %s2390_s24  }
   0xf   : > { %2953 = sst [smem:[#allocation22_spill]] %s2390_s24  ;;  %s2525_s27 = sadd.s32 1, %s2390_s24  }
  0x10   : > { %2954 = sst [smem:[#allocation23_spill]] %s2525_s27  ;;  %s392_s28 = sadd.s32 1, %s2386_s23 }
  0x11   : > { %s389_s29 = ssub.s32 %s2390_s24, %s2525_s27  ;;  %p402_p0 = scmp.ne.s32.totalorder %s2386_s23, %s2382_s22 }
  0x12   : > { %p390_p1 = scmp.eq.s32.totalorder %s389_s29, 0  ;;  %p403_p2 = scmp.eq.s32.totalorder %s2521_s25, 1 }
  0x13   : > { %p408_p3 = scmp.ne.s32.totalorder %s2382_s22, %s2378_s21  ;;  %p409_p4 = scmp.eq.s32.totalorder %s1890_s26, 1 }
  0x14   : > { %s2536_s30 = scalar_select %p390_p1, %s2386_s23, %s392_s28  }
  0x15   : > { %p2538_p5 = por %p403_p2, %p402_p0  ;;  %p2542_p6 = por %p409_p4, %p408_p3 }
  0x16   : > { %2955 = sst [smem:[#allocation24_spill]] %s2536_s30  ;;  %p1891_p7 = scmp.ge.s32.totalorder %s2390_s24, 1 }
  0x17   : > { %s2957_s17 = scalar_select %p2542_p6, 1, 0 }
  0x18   : > { %p416_p8 = scmp.lt.s32.totalorder %s2390_s24, 3  ;;  %p2006_p9 = scmp.eq.s32.totalorder %s2521_s25, 0 }
  0x19   : > { %2958 = sst [smem:[#allocation25_spill]] %s2957_s17  ;;  %s2392_s28 = smov [#allocation6]  }
  0x1a   : > { %p2549_p10 = pnand %p1891_p7, %p416_p8  ;;  %s2960_s5 = sld [smem:[#allocation28_spill]] }
  0x1b   : > { %s448_s29 = sshll.u32 %s2392_s28, 4  ;;  %s2961_s9 = sld [smem:[#allocation29_spill]]  ;;  %s449_s29 = int_to_ptr.vmem [resolvable:$true] %s448_s29 }
  0x1c   : > { %p1983_p11 = pneg %p2549_p10  ;;  %s2963_s3 = sld [smem:[#allocation27_spill]] }
  0x1d   : > { %s2393_s21 = smov [#allocation9]   ;;  %s2394_s24 = smov [#allocation3]  }
  0x1e   : > { %p2563_p12 = pnand %p2006_p9, %p1983_p11  ;;  %s478_s28 = sshll.u32 %s2393_s21, 4  ;;  %s479_s28 = int_to_ptr.vmem [resolvable:$true] %s478_s28 }
  0x1f   : > { %s433_s15 = sshll.u32 %s2394_s24, 4  ;;  %s2395_s19 = smov [#allocation8]   ;;  %s434_s15 = int_to_ptr.vmem [resolvable:$true] %s433_s15 }
  0x20   : > { %s446_s26 = sshll.u32 %s2960_s5, 4  ;;  %s463_s21 = sshll.u32 %s2395_s19, 4  ;;  %s447_s26 = int_to_ptr.hbm [resolvable:$true] %s446_s26  ;;  %s464_s21 = int_to_ptr.vmem [resolvable:$true] %s463_s21 }
  0x21   : > { %s476_s27 = sshll.u32 %s2961_s9, 4  ;;  %s461_s9 = sshll.u32 %s2926_s7, 4  ;;  %s477_s27 = int_to_ptr.hbm [resolvable:$true] %s476_s27  ;;  %s462_s9 = int_to_ptr.hbm [resolvable:$true] %s461_s9 }
  0x22   : > { %s431_s5 = sshll.u32 %s2963_s3, 4  ;;  %s502_s23 = sshll.u32 %s2930_s11, 4  ;;  %s432_s5 = int_to_ptr.hbm [resolvable:$true] %s431_s5  ;;  %s503_s23 = int_to_ptr.hbm [resolvable:$true] %s502_s23 }
  0x23   : > { %1989 = dma.hbm_to_vmem [thread:$0]  (!%p2563_p12), %s447_s26, 16, %s449_s29, [#allocation7]  }
  0x24   : > { %1995 = dma.hbm_to_vmem [thread:$0]  (!%p2563_p12), %s477_s27, 16, %s479_s28, [#allocation10]  }
  0x25   : > { %1986 = dma.hbm_to_vmem [thread:$0]  (!%p2563_p12), %s432_s5, 16, %s434_s15, [#allocation4]  }
  0x26   : > { %s487_s26 = sshll.u32 %s2929_s10, 4  ;;  %s2396_s27 = smov [#allocation11]   ;;  %s488_s26 = int_to_ptr.hbm [resolvable:$true] %s487_s26 }
  0x27   : > { %1992 = dma.hbm_to_vmem [thread:$0]  (!%p2563_p12), %s462_s9, 16, %s464_s21, [#allocation7]  }
  0x28   : > { %s489_s29 = sshll.u32 %s2396_s27, 4  ;;  %s2397_s30 = smov 128   ;;  %s490_s29 = int_to_ptr.vmem [resolvable:$true] %s489_s29 }
  0x29   : > { %s2398_s5 = smov 8   ;;  %s2399_s15 = smov [#allocation12]  }
  0x2a   : > { %1998 = dma.hbm_to_vmem [thread:$0]  (!%p2563_p12), %s488_s26, 512, %s490_s29, [#allocation10], %s2397_s30, %s2397_s30, %s2398_s5  }
  0x2b   : > { %s504_s3 = sshll.u32 %s2399_s15, 4  ;;  %541 = sbr.rel (%p2549_p10) target bundleno = 3948 (0xf6c), region = 80  ;;  %s505_s3 = int_to_ptr.vmem [resolvable:$true] %s504_s3 }
  0x2c   : > { %2001 = dma.hbm_to_vmem [thread:$0]  (!%p2563_p12), %s503_s23, 16, %s505_s3, [#allocation13]  }
  0x30   : > { %2357 = dma.done.wait (%p2006_p9), [#allocation4], 16  }
  0x31   : > { %2359 = vsyncadd (%p2006_p9), [#allocation4], 4294967280 }
  0x32   : > { %2361 = dma.done.wait (%p2006_p9), [#allocation7], 32  }
  0x33   : > { %2363 = vsyncadd (%p2006_p9), [#allocation7], 4294967264 }
  0x34   : > { %2365 = dma.done.wait (%p2006_p9), [#allocation10], 528  }
  0x35   : > { %2367 = vsyncadd (%p2006_p9), [#allocation10], 4294966768 }
  0x36   : > { %2369 = dma.done.wait (%p2006_p9), [#allocation13], 16  }
  0x37   : > { %2371 = vsyncadd (%p2006_p9), [#allocation13], 4294967280  ;;  %p625_p13 = scmp.lt.s32.totalorder %s2521_s25, 1  ;;  %v645_v0 = vld [vmem:[%s2921_s2 + $0x18] sm:$0xff]  ;;  %v644_v1 = vld [vmem:[%s2921_s2 + $0x10] sm:$0xff]  ;;  %s2964_s28 = sld [smem:[#allocation26_spill]] }
  0x38   : > { %671 = vmatpush.msra.mxu0 %v645_v0  ;;  %v643_v2 = vld [vmem:[%s2921_s2 + $0x8] sm:$0xff]  ;;  %v642_v3 = vld [vmem:[%s2921_s2] sm:$0xff]  ;;  %vm655_vm0 = vcmask 261120   ;;  %s2400_s15 = smov 64   ;;  %s2401_s3 = smov 120   ;;  %vm682_vm1 = vcmask 64512  }
  0x39   : > { %s2611_s9 = scalar_select %p625_p13, %s2521_s25, 1  ;;  %v2084_v5 = vld [vmem:[#allocation3] ss:$0 sm:$0xff]  ;;  %vm840_vm13 = vcmask 130112  }
  0x3a   : > { %672 = vmatpush.msra.mxu0 %v644_v1  ;;  %s2402_s18 = smov 96   ;;  %s2403_s19 = smov 56  }
  0x3b   : > { %s2942_s17 = sshll.u32 %s2611_s9, 3  ;;  %s2404_s21 = smov 88  }
  0x3c   : > { %673 = vmatpush.msra.mxu0 %v643_v2  ;;  %s2405_s20 = smov 104   ;;  %s2406_s26 = smov 72  }
  0x3d   : > { %s628_s23 = scalar_lea.vmem %s2964_s28, %s2942_s17  ;;  %s2407_s27 = smov 80  }
  0x3e   : > { %v2631_v4 = vld [vmem:[%s628_s23] sm:$0xff]  ;;  %674 = vmatpush.msra.mxu0 %v642_v3  ;;  %s2408_s29 = smov 112   ;;  %s2409_s24 = smov 40  }
  0x3f   : > { %1911 = vmatmul.msk.f32.vlgmr.msra.gmra.mxu0 %vm655_vm0, %v2631_v4  ;;  %s2943_s28 = smov 8   ;;  %s2411_s23 = smov 48  }
  0x40   : > { %s2944_s30 = smov 16   ;;  %s2945_s5 = smov 24  }
  0x41   : > { %s1956_s17 = sshll.u32 %s2611_s9, 4 }
  0xbc   : > { %v676_v6 = vpop.f32.mrf.mxu0 }
  0xbd   : > { %v2635_v7 = vadd.f32 %v2084_v5, %v676_v6 }
  0xbf   : > { %731 = vrot.lane.b32.xlu2 %v2635_v7, %s2400_s15  ;;  %758 = vrot.lane.b32.xlu1 %v2635_v7, %s2401_s3 }
  0xc0   : > { %680 = vrot.lane.b32.xlu0 %v2635_v7, %s2402_s18 }
  0xc7   : > { %810 = vrot.lane.b32.xlu2 %v2635_v7, %s2403_s19 }
  0xc8   : > { %760 = vrot.lane.b32.xlu0 %v2635_v7, %s2404_s21 }
 0x119   : > { %v732_v8 = vpop.permute.xlu2 %731 }
 0x11a   : > { %752 = vmatpush.msra.mxu2 %v732_v8 }
 0x121   : > { %v811_v9 = vpop.permute.xlu2 %810 }
 0x122   : > { %831 = vmatpush.msrb.mxu2 %v811_v9 }
 0x131   : > { %v759_v12 = vpop.permute.xlu1 %758 }
 0x132   : > { %v681_v10 = vpop.permute.xlu0 %680 }
 0x133   : > { %1912 = vmatpush.xpose.msk.msra.mxu1 %vm682_vm1, %v681_v10 }
 0x136   : > { %1913 = vmatmul.msk.f32.vlgmr.msra.gmra.mxu1 %vm682_vm1, %v2635_v7 }
 0x13a   : > { %v761_v11 = vpop.permute.xlu0 %760 }
 0x13b   : > { %1915 = vmatpush.xpose.msk.msra.mxu3 %vm682_vm1, %v761_v11 }
 0x13e   : > { %1916 = vmatmul.msk.f32.vlgmr.msra.gmra.mxu3 %vm682_vm1, %v759_v12 }
 0x1b3   : > { %v704_v13 = vpop.f32.mrf.mxu1 }
 0x1b4   : > { %v707_v14 = vsel %vm682_vm1, %v704_v13, -inf }
 0x1b5   : > { %708 = vmax.xlane.f32.xlu1 %v707_v14 }
 0x1c1   : > { %v783_v15 = vpop.f32.mrf.mxu3 }
 0x1c2   : > { %v786_v16 = vsel %vm682_vm1, %v783_v15, -inf }
 0x1c3   : > { %787 = vmax.xlane.f32.xlu2 %v786_v16 }
 0x1ce   : > { %926 = vrot.lane.b32.xlu1 %v2635_v7, %s2405_s20 }
 0x1db   : > { %928 = vrot.lane.b32.xlu2 %v2635_v7, %s2406_s26 }
 0x228   : > { %v709_v17 = vpop.xlane.xlu1 %708 }
 0x229   : > { %v710_v18 = vsub.f32 %v704_v13, %v709_v17 }
 0x22b   : > { %v711_v19 = vmul.f32 1.442695, %v710_v18 }
 0x22d   : > { %2090 = vpow2.f32 %v711_v19 }
 0x233   : > { %v2091_v20 = vpop.eup %2090 }
 0x234   : > { %v713_v21 = vsel %vm682_vm1, %v2091_v20, 0.0 }
 0x235   : > { %714 = vadd.xlane.f32.xlu2 %v713_v21 }
 0x236   : > { %v788_v22 = vpop.xlane.xlu2 %787 }
 0x237   : > { %v789_v23 = vsub.f32 %v783_v15, %v788_v22 }
 0x239   : > { %v790_v24 = vmul.f32 1.442695, %v789_v23 }
 0x23b   : > { %2092 = vpow2.f32 %v790_v24 }
 0x23e   : > { %v929_v27 = vpop.permute.xlu2 %928 }
 0x240   : > { %v927_v54 = vpop.permute.xlu1 %926 }
 0x241   : > { %v2093_v25 = vpop.eup %2092 }
 0x242   : > { %v792_v26 = vsel %vm682_vm1, %v2093_v25, 0.0 }
 0x243   : > { %793 = vadd.xlane.f32.xlu0 %v792_v26 }
 0x24d   : > { %844 = vrot.lane.b32.xlu2 %v2635_v7, %s2407_s27 }
 0x257   : > { %842 = vrot.lane.b32.xlu0 %v2635_v7, %s2408_s29 }
 0x2a8   : > { %v715_v28 = vpop.xlane.xlu2 %714 }
 0x2a9   : > { %2094 = vrcp.f32 %v715_v28  ;;  %v727_v33 = vand.u32 2147483648, %v715_v28  ;;  %v725_v35 = vand.u32 2147483647, %v715_v28  ;;  %vm721_vm3 = vweird.f32 %v715_v28 }
 0x2ab   : > { %v728_v38 = vor.u32 1.1754944e-38, %v727_v33  ;;  %vm726_vm5 = vcmp.eq.f32.partialorder %v725_v35, 8.507059e+37 }
 0x2af   : > { %v2095_v29 = vpop.eup %2094 }
 0x2b0   : > { %v717_v30 = vmul.f32 %v2095_v29, %v715_v28  ;;  %v845_v31 = vpop.permute.xlu2 %844  ;;  %vm722_vm2 = vweird.f32 %v2095_v29 }
 0x2b1   : > { %1918 = vmatpush.xpose.msk.msrb.mxu1 %vm682_vm1, %v845_v31  ;;  %vm723_vm4 = vmor %vm721_vm3, %vm722_vm2 }
 0x2b2   : > { %v718_v32 = vsub.f32 1.0, %v717_v30 }
 0x2b4   : > { %v719_v34 = vmul.f32 %v2095_v29, %v718_v32 }
 0x2b6   : > { %v794_v36 = vpop.xlane.xlu0 %793  ;;  %v720_v37 = vadd.f32 %v2095_v29, %v719_v34 }
 0x2b7   : > { %2096 = vrcp.f32 %v794_v36  ;;  %v806_v45 = vand.u32 2147483648, %v794_v36  ;;  %v804_v47 = vand.u32 2147483647, %v794_v36  ;;  %vm800_vm7 = vweird.f32 %v794_v36 }
 0x2b8   : > { %v724_v39 = vsel %vm723_vm4, %v2095_v29, %v720_v37 }
 0x2b9   : > { %v729_v40 = vsel %vm726_vm5, %v728_v38, %v724_v39  ;;  %v807_v49 = vor.u32 1.1754944e-38, %v806_v45  ;;  %vm805_vm9 = vcmp.eq.f32.partialorder %v804_v47, 8.507059e+37  ;;  %vm924_vm5 = vcmask 195712   ;;  %v650_v38 = vld [vmem:[%s2923_s4 + $0x18] sm:$0xff]  ;;  %v649_v39 = vld [vmem:[%s2923_s4 + $0x10] sm:$0xff] }
 0x2ba   : > { %v730_v41 = vmul.f32 %v2091_v20, %v729_v40  ;;  %1029 = vmatpush.msra.mxu1 %v650_v38  ;;  %v648_v40 = vld [vmem:[%s2923_s4 + $0x8] sm:$0xff] }
 0x2bc   : > { %1914 = vmatmul.msk.f32.vlgmr.msra.gmra.mxu2 %vm682_vm1, %v730_v41  ;;  %1030 = vmatpush.msra.mxu1 %v649_v39  ;;  %v647_v41 = vld [vmem:[%s2923_s4] sm:$0xff] }
 0x2bd   : > { %v2097_v42 = vpop.eup %2096  ;;  %1921 = vmatpush.xpose.msk.msra.mxu2 %vm682_vm1, %v929_v27 }
 0x2be   : > { %v796_v43 = vmul.f32 %v2097_v42, %v794_v36  ;;  %vm801_vm6 = vweird.f32 %v2097_v42  ;;  %1031 = vmatpush.msra.mxu1 %v648_v40 }
 0x2bf   : > { %vm802_vm8 = vmor %vm800_vm7, %vm801_vm6  ;;  %vm1008_vm6 = vcmask 261312  }
 0x2c0   : > { %v797_v44 = vsub.f32 1.0, %v796_v43  ;;  %1032 = vmatpush.msra.mxu1 %v647_v41 }
 0x2c2   : > { %v798_v46 = vmul.f32 %v2097_v42, %v797_v44  ;;  %v2085_v44 = vld [vmem:[#allocation6] ss:$0 sm:$0xff] }
 0x2c4   : > { %v799_v48 = vadd.f32 %v2097_v42, %v798_v46 }
 0x2c6   : > { %v803_v50 = vsel %vm802_vm8, %v2097_v42, %v799_v48 }
 0x2c7   : > { %v808_v51 = vsel %vm805_vm9, %v807_v49, %v803_v50  ;;  %v1073_v49 = vld [vmem:[%s2925_s6 + $0x10] sm:$0xff]  ;;  %v1074_v50 = vld [vmem:[%s2925_s6 + $0x18] sm:$0xff] }
 0x2c8   : > { %v809_v52 = vmul.f32 %v2093_v25, %v808_v51  ;;  %v2074_v51 = vpack.i.bf16 %v1073_v49, %v1074_v50 }
 0x2c9   : > { %v843_v53 = vpop.permute.xlu0 %842 }
 0x2ca   : > { %1917 = vmatmul.msk.f32.vlgmr.msrb.gmra.mxu2 %vm682_vm1, %v809_v52  ;;  %1919 = vmatmul.msk.f32.vlgmr.msrb.gmra.mxu1 %vm682_vm1, %v843_v53  ;;  %v2414_v52 = vmov 32.0   ;;  %v1072_v53 = vld [vmem:[%s2925_s6 + $0x8] sm:$0xff] }
 0x2d2   : > { %1922 = vmatmul.msk.f32.vlgmr.msra.gmra.mxu2 %vm682_vm1, %v927_v54 }
 0x33f   : > { %v754_v55 = vpop.f32.mrf.mxu2 }
 0x340   : > { %757 = vst.msk [vmem:[#allocation2] sm:$0xff] %vm682_vm1, %v754_v55 }
 0x347   : > { %v867_v56 = vpop.f32.mrf.mxu1 }
 0x348   : > { %v870_v57 = vsel %vm682_vm1, %v867_v56, -inf }
 0x349   : > { %871 = vmax.xlane.f32.xlu2 %v870_v57 }
 0x34d   : > { %v833_v58 = vpop.f32.mrf.mxu2 }
 0x355   : > { %v951_v59 = vpop.f32.mrf.mxu2 }
 0x356   : > { %v954_v60 = vsel %vm682_vm1, %v951_v59, -inf }
 0x357   : > { %955 = vmax.xlane.f32.xlu1 %v954_v60 }
 0x370   : > { %978 = vrot.lane.b32.xlu1 %v2635_v7, %s2409_s24 }
 0x3bc   : > { %v872_v61 = vpop.xlane.xlu2 %871 }
 0x3bd   : > { %v873_v62 = vsub.f32 %v867_v56, %v872_v61 }
 0x3bf   : > { %v874_v63 = vmul.f32 1.442695, %v873_v62 }
 0x3c1   : > { %2098 = vpow2.f32 %v874_v63 }
 0x3c7   : > { %v2099_v0 = vpop.eup %2098 }
 0x3c8   : > { %v876_v1 = vsel %vm682_vm1, %v2099_v0, 0.0 }
 0x3c9   : > { %877 = vadd.xlane.f32.xlu0 %v876_v1 }
 0x3ca   : > { %v956_v2 = vpop.xlane.xlu1 %955 }
 0x3cb   : > { %v957_v3 = vsub.f32 %v951_v59, %v956_v2 }
 0x3cd   : > { %v958_v5 = vmul.f32 1.442695, %v957_v3 }
 0x3cf   : > { %2100 = vpow2.f32 %v958_v5 }
 0x3d5   : > { %v2101_v6 = vpop.eup %2100 }
 0x3d6   : > { %v960_v8 = vsel %vm682_vm1, %v2101_v6, 0.0 }
 0x3d7   : > { %961 = vadd.xlane.f32.xlu2 %v960_v8 }
 0x3dd   : > { %837 = vrot.lane.b32.xlu0 %v833_v58, %s2943_s28 }
 0x3e2   : > { %v979_v9 = vpop.permute.xlu1 %978 }
 0x3e3   : > { %999 = vmatpush.msrb.mxu2 %v979_v9 }
 0x3ef   : > { %894 = vrot.lane.b32.xlu2 %v2635_v7, %s2411_s23  ;;  %s1953_s23 = sshll.u32 %s2521_s25, 3 }
 0x43c   : > { %v878_v10 = vpop.xlane.xlu0 %877 }
 0x43d   : > { %2102 = vrcp.f32 %v878_v10  ;;  %v890_v15 = vand.u32 2147483648, %v878_v10  ;;  %vm884_vm11 = vweird.f32 %v878_v10  ;;  %v888_v17 = vand.u32 2147483647, %v878_v10 }
 0x43f   : > { %v891_v20 = vor.u32 1.1754944e-38, %v890_v15  ;;  %vm889_vm14 = vcmp.eq.f32.partialorder %v888_v17, 8.507059e+37 }
 0x443   : > { %v2103_v11 = vpop.eup %2102 }
 0x444   : > { %v880_v12 = vmul.f32 %v2103_v11, %v878_v10  ;;  %vm885_vm10 = vweird.f32 %v2103_v11 }
 0x445   : > { %vm886_vm12 = vmor %vm884_vm11, %vm885_vm10  ;;  %vm1184_vm11 = vcmask 97280  }
 0x446   : > { %v881_v13 = vsub.f32 1.0, %v880_v12  ;;  %v2086_v12 = vld [vmem:[#allocation8] ss:$0 sm:$0xff] }
 0x448   : > { %v882_v14 = vmul.f32 %v2103_v11, %v881_v13 }
 0x44a   : > { %v883_v16 = vadd.f32 %v2103_v11, %v882_v14  ;;  %v962_v18 = vpop.xlane.xlu2 %961 }
 0x44b   : > { %2104 = vrcp.f32 %v962_v18  ;;  %v974_v27 = vand.u32 2147483648, %v962_v18  ;;  %v972_v29 = vand.u32 2147483647, %v962_v18  ;;  %vm968_vm2 = vweird.f32 %v962_v18 }
 0x44c   : > { %v887_v19 = vsel %vm886_vm12, %v2103_v11, %v883_v16  ;;  %2106 = vrcp.f32 %v2414_v52  ;;  %vm1217_vm12 = vcmask 1043456  }
 0x44d   : > { %v892_v7 = vsel %vm889_vm14, %v891_v20, %v887_v19  ;;  %v975_v31 = vor.u32 1.1754944e-38, %v974_v27  ;;  %vm973_vm4 = vcmp.eq.f32.partialorder %v972_v29, 8.507059e+37  ;;  %v2727_v20 = vld [vmem:[%s2933_s14] sm:$0x3f] }
 0x44e   : > { %v893_v25 = vmul.f32 %v2099_v0, %v892_v7 }
 0x44f   : > { %v838_v21 = vpop.permute.xlu0 %837 }
 0x450   : > { %841 = vst.msk [vmem:[#allocation2] sm:$0xff] %vm840_vm13, %v838_v21 }
 0x451   : > { %v2105_v22 = vpop.eup %2104 }
 0x452   : > { %v964_v23 = vmul.f32 %v2105_v22, %v962_v18  ;;  %v895_v24 = vpop.permute.xlu2 %894  ;;  %vm969_vm15 = vweird.f32 %v2105_v22  ;;  %v2107_v55 = vpop.eup %2106 }
 0x453   : > { %915 = vmatpush.msrb.mxu3 %v895_v24  ;;  %vm970_vm3 = vmor %vm968_vm2, %vm969_vm15  ;;  %v1042_v56 = vmul.f32 32.0, %v2107_v55  ;;  %vm1046_vm7 = vweird.f32 %v2107_v55 }
 0x454   : > { %v965_v26 = vsub.f32 1.0, %v964_v23  ;;  %1920 = vmatmul.msk.f32.vlgmr.msrb.gmra.mxu3 %vm682_vm1, %v893_v25  ;;  %v1069_v25 = vperm.slane %v2727_v20, 1 }
 0x455   : > { %1099 = vmatpush.msra.mxu3 %v1074_v50  ;;  %v1043_v57 = vsub.f32 1.0, %v1042_v56 }
 0x456   : > { %v966_v28 = vmul.f32 %v2105_v22, %v965_v26 }
 0x457   : > { %1100 = vmatpush.msra.mxu3 %v1073_v49  ;;  %v1044_v58 = vmul.f32 %v2107_v55, %v1043_v57 }
 0x458   : > { %v967_v30 = vadd.f32 %v2105_v22, %v966_v28 }
 0x459   : > { %1101 = vmatpush.msra.mxu3 %v1072_v53  ;;  %v1045_v59 = vadd.f32 %v2107_v55, %v1044_v58 }
 0x45a   : > { %v971_v32 = vsel %vm970_vm3, %v2105_v22, %v967_v30  ;;  %v1067_v22 = vperm.slane %v2727_v20, 0 }
 0x45b   : > { %v976_v33 = vsel %vm973_vm4, %v975_v31, %v971_v32  ;;  %v2712_v60 = vsel %vm1046_vm7, %v2107_v55, %v1045_v59 }
 0x45c   : > { %v977_v34 = vmul.f32 %v2101_v6, %v976_v33 }
 0x45e   : > { %1923 = vmatmul.msk.f32.vlgmr.msrb.gmra.mxu2 %vm682_vm1, %v977_v34 }
 0x4d7   : > { %v917_v35 = vpop.f32.mrf.mxu3 }
 0x4d8   : > { %921 = vrot.lane.b32.xlu2 %v917_v35, %s2944_s30  ;;  %s1730_s30 = scalar_lea.hbm %s2935_s16, %s1953_s23 }
 0x4d9   : > { %s1734_s15 = sshll.u32 %s1730_s30, 4  ;;  %s1735_s15 = int_to_ptr.hbm [resolvable:$true] %s1734_s15 }
 0x4e1   : > { %v1001_v36 = vpop.f32.mrf.mxu2 }
 0x4e2   : > { %1005 = vrot.lane.b32.xlu0 %v1001_v36, %s2945_s5  ;;  %s633_s5 = scalar_lea.vmem %s2920_s1, %s1956_s17 }
 0x4e3   : > { %v639_v10 = vld [vmem:[%s633_s5] sm:$0xff]  ;;  %v640_v11 = vld [vmem:[%s633_s5 + $0x8] sm:$0xf] }
 0x4ea   : > { %2075 = vrot.lane.b32.xlu0 %v2074_v51, %s2402_s18 }
 0x532   : > { %v922_v37 = vpop.permute.xlu2 %921 }
 0x533   : > { %925 = vst.msk [vmem:[#allocation2] sm:$0xff] %vm924_vm5, %v922_v37 }
 0x554   : > { %v1006_v42 = vpop.permute.xlu0 %1005 }
 0x555   : > { %1009 = vst.msk [vmem:[#allocation2] sm:$0xff] %vm1008_vm6, %v1006_v42 }
 0x55c   : > { %v1010_v43 = vld [vmem:[#allocation2] sm:$0xff]  ;;  %v2076_v2 = vpop.permute.xlu0 %2075 }
 0x55d   : > { %1924 = vmatmul.msk.f32.vlgmr.msra.gmra.mxu1 %vm655_vm0, %v1010_v43  ;;  %v2077_v3 = vunpack.i.l.bf16 %v2076_v2  ;;  %v2078_v5 = vunpack.i.h.bf16 %v2076_v2 }
 0x55f   : > { %1144 = vmatpush.msrb.mxu0 %v2077_v3 }
 0x561   : > { %1145 = vmatpush.msrb.mxu0 %v2078_v5 }
 0x5da   : > { %v1034_v45 = vpop.f32.mrf.mxu1 }
 0x5db   : > { %v1035_v46 = vadd.f32 %v2085_v44, %v1034_v45 }
 0x5dd   : > { %v1037_v47 = vadd.f32 %v1035_v46, %v2631_v4  ;;  %v1071_v4 = vld [vmem:[%s2925_s6] sm:$0xff] }
 0x5de   : > { %v2079_v54 = vpack.i.bf16 %v1071_v4, %v1072_v53  ;;  %1102 = vmatpush.msra.mxu3 %v1071_v4 }
 0x5df   : > { %v1038_v48 = vsel %vm655_vm0, %v1037_v47, 0.0 }
 0x5e0   : > { %1039 = vadd.xlane.f32.xlu1 %v1038_v48  ;;  %2080 = vrot.lane.b32.xlu0 %v2079_v54, %s2402_s18 }
 0x5e8   : > { %1123 = vrot.lane.b32.xlu0 %v2086_v12, %s2402_s18 }
 0x652   : > { %v2081_v6 = vpop.permute.xlu0 %2080 }
 0x653   : > { %v1040_v61 = vpop.xlane.xlu1 %1039  ;;  %v2082_v8 = vunpack.i.l.bf16 %v2081_v6  ;;  %v2083_v9 = vunpack.i.h.bf16 %v2081_v6 }
 0x654   : > { %v1048_v62 = vmul.f32 %v2712_v60, %v1040_v61 }
 0x655   : > { %1146 = vmatpush.msrb.mxu0 %v2082_v8 }
 0x656   : > { %v1049_v63 = vsub.f32 %v1037_v47, %v1048_v62 }
 0x657   : > { %1147 = vmatpush.msrb.mxu0 %v2083_v9 }
 0x658   : > { %v1050_v0 = vmul.f32 %v1049_v63, %v1049_v63  ;;  %1926 = vmatmul.msk.f32.vlgmr.msrb.gmra.mxu0 %vm655_vm0, %v639_v10 }
 0x65a   : > { %v1051_v1 = vsel %vm655_vm0, %v1050_v0, 0.0  ;;  %v1124_v28 = vpop.permute.xlu0 %1123 }
 0x65b   : > { %1052 = vadd.xlane.f32.xlu2 %v1051_v1 }
 0x660   : > { %1927 = vmatmul.msk.f32.gmra.mxu0 %vm655_vm0, %v640_v11 }
 0x6ce   : > { %v1053_v13 = vpop.xlane.xlu2 %1052 }
 0x6cf   : > { %v1054_v14 = vmul.f32 %v1053_v13, %v2712_v60 }
 0x6d1   : > { %v1055_v15 = vadd.f32 1e-12, %v1054_v14 }
 0x6d3   : > { %2108 = vrsqrt.f32 %v1055_v15  ;;  %vm1062_vm9 = vweird.f32 %v1055_v15 }
 0x6d5   : > { %v1149_v29 = vpop.f32.mrf.mxu0 }
 0x6d6   : > { %v2735_v30 = vadd.f32 %v1149_v29, %v1124_v28 }
 0x6d8   : > { %1243 = vrot.lane.b32.xlu1 %v2735_v30, %s2401_s3 }
 0x6d9   : > { %v2109_v16 = vpop.eup %2108 }
 0x6da   : > { %v1057_v17 = vmul.f32 %v2109_v16, %v1055_v15  ;;  %vm1063_vm8 = vweird.f32 %v2109_v16 }
 0x6db   : > { %vm1064_vm10 = vmor %vm1062_vm9, %vm1063_vm8 }
 0x6dc   : > { %v1058_v18 = vmul.f32 %v2109_v16, %v1057_v17 }
 0x6dd   : > { %v1152_v31 = vpop.f32.mrf.mxu0 }
 0x6de   : > { %v1059_v19 = vmul.f32 0.5, %v1058_v18  ;;  %v2739_v32 = vadd.f32 %v1152_v31, %v1124_v28 }
 0x6e0   : > { %v1060_v21 = vsub.f32 1.5, %v1059_v19  ;;  %1928 = vmatpush.xpose.msk.msra.mxu2 %vm682_vm1, %v2739_v32  ;;  %1209 = vrot.lane.b32.xlu1 %v2735_v30, %s2402_s18 }
 0x6e1   : > { %1245 = vrot.lane.b32.xlu2 %v2739_v32, %s2401_s3 }
 0x6e2   : > { %v1061_v7 = vmul.f32 %v2109_v16, %v1060_v21 }
 0x6e4   : > { %v1065_v23 = vsel %vm1064_vm10, %v2109_v16, %v1061_v7  ;;  %1929 = vmatpush.xpose.msk.msra.mxu2 %vm682_vm1, %v2735_v30 }
 0x6e5   : > { %v1066_v24 = vmul.f32 %v1065_v23, %v1049_v63 }
 0x6e7   : > { %v1068_v26 = vmul.f32 %v1067_v22, %v1066_v24 }
 0x6e8   : > { %1429 = vrot.lane.b32.xlu1 %v2739_v32, %s2405_s20 }
 0x6e9   : > { %v2731_v27 = vadd.f32 %v1069_v25, %v1068_v26 }
 0x6eb   : > { %1925 = vmatmul.msk.f32.vlgmr.msra.gmra.mxu3 %vm655_vm0, %v2731_v27 }
 0x73b   : > { %v1246_v35 = vpop.permute.xlu2 %1245 }
 0x73c   : > { %1933 = vmatpush.xpose.msk.msrb.mxu3 %vm682_vm1, %v1246_v35 }
 0x74a   : > { %v1244_v36 = vpop.permute.xlu1 %1243 }
 0x74b   : > { %1934 = vmatpush.xpose.msk.msrb.mxu3 %vm682_vm1, %v1244_v36 }
 0x752   : > { %v1210_v37 = vpop.permute.xlu1 %1209 }
 0x75a   : > { %v1430_v38 = vpop.permute.xlu1 %1429 }
 0x75b   : > { %1943 = vmatpush.xpose.msk.msra.mxu0 %vm682_vm1, %v1430_v38 }
 0x76e   : > { %v1104_v33 = vpop.f32.mrf.mxu3 }
 0x76f   : > { %v1105_v34 = vadd.f32 %v2086_v12, %v1104_v33 }
 0x771   : > { %1241 = vrot.lane.b32.xlu2 %v1105_v34, %s2401_s3  ;;  %1930 = vmatmul.msk.f32.vlgmr.msra.gmra.mxu2 %vm682_vm1, %v1105_v34  ;;  %s2965_s3 = smov 8  }
 0x779   : > { %1337 = vrot.lane.b32.xlu2 %v2739_v32, %s2408_s29 }
 0x781   : > { %1335 = vrot.lane.b32.xlu2 %v2735_v30, %s2408_s29 }
 0x789   : > { %1425 = vrot.lane.b32.xlu2 %v1105_v34, %s2405_s20 }
 0x7cb   : > { %v1242_v39 = vpop.permute.xlu2 %1241 }
 0x7cc   : > { %1935 = vmatmul.msk.f32.vlgmr.msrb.gmra.mxu3 %vm682_vm1, %v1242_v39 }
 0x7d3   : > { %v1338_v47 = vpop.permute.xlu2 %1337 }
 0x7db   : > { %v1336_v49 = vpop.permute.xlu2 %1335 }
 0x7e3   : > { %v1426_v1 = vpop.permute.xlu2 %1425 }
 0x7f4   : > { %v1181_v40 = vpop.f32.mrf.mxu2 }
 0x7f5   : > { %v1185_v41 = vsel %vm1184_vm11, %v1181_v40, -inf }
 0x7f6   : > { %1186 = vmax.xlane.f32.xlu0 %v1185_v41 }
 0x80a   : > { %1211 = vrot.lane.b32.xlu0 %v2739_v32, %s2402_s18  ;;  %s622_s18 = sand.u32 1, %s2382_s22  }
 0x80b   : > { %s1717_s19 = scalar_lea.sflag [#allocation5], %s622_s18 }
 0x812   : > { %1333 = vrot.lane.b32.xlu0 %v1105_v34, %s2408_s29  ;;  %s2332_s29 = scalar_lea.hbm %s2935_s16, 16 }
 0x84f   : > { %v1270_v50 = vpop.f32.mrf.mxu3 }
 0x850   : > { %v1273_v51 = vsel %vm1184_vm11, %v1270_v50, -inf }
 0x869   : > { %v1187_v42 = vpop.xlane.xlu0 %1186 }
 0x86a   : > { %v1188_v43 = vsub.f32 %v1181_v40, %v1187_v42 }
 0x86c   : > { %v1189_v44 = vmul.f32 1.442695, %v1188_v43 }
 0x86e   : > { %2110 = vpow2.f32 %v1189_v44 }
 0x874   : > { %v2111_v45 = vpop.eup %2110 }
 0x875   : > { %v1191_v46 = vsel %vm1184_vm11, %v2111_v45, 0.0 }
 0x876   : > { %1192 = vadd.xlane.f32.xlu1 %v1191_v46 }
 0x87c   : > { %v1212_v48 = vpop.permute.xlu0 %1211 }
 0x87d   : > { %1931 = vmatpush.msk.msrb.mxu1 %vm1217_vm12, %v1212_v48 }
 0x87f   : > { %1235 = vmatpush.msrb.mxu1 %v1210_v37 }
 0x881   : > { %1938 = vmatpush.xpose.msk.msra.mxu1 %vm682_vm1, %v1338_v47 }
 0x884   : > { %v1334_v2 = vpop.permute.xlu0 %1333 }
 0x885   : > { %1939 = vmatpush.xpose.msk.msra.mxu1 %vm682_vm1, %v1336_v49 }
 0x88f   : > { %1427 = vrot.lane.b32.xlu1 %v2735_v30, %s2405_s20 }
 0x8b9   : > { %1274 = vmax.xlane.f32.xlu1 %v1273_v51 }
 0x8e9   : > { %v1193_v52 = vpop.xlane.xlu1 %1192 }
 0x8ea   : > { %2112 = vrcp.f32 %v1193_v52  ;;  %v1205_v55 = vand.u32 2147483648, %v1193_v52  ;;  %v1203_v57 = vand.u32 2147483647, %v1193_v52  ;;  %vm1199_vm15 = vweird.f32 %v1193_v52 }
 0x8ec   : > { %v1206_v59 = vor.u32 1.1754944e-38, %v1205_v55  ;;  %vm1204_vm3 = vcmp.eq.f32.partialorder %v1203_v57, 8.507059e+37 }
 0x8f0   : > { %v2113_v4 = vpop.eup %2112 }
 0x8f1   : > { %v1195_v53 = vmul.f32 %v2113_v4, %v1193_v52  ;;  %vm1200_vm14 = vweird.f32 %v2113_v4 }
 0x8f2   : > { %vm1201_vm2 = vmor %vm1199_vm15, %vm1200_vm14 }
 0x8f3   : > { %v1196_v54 = vsub.f32 1.0, %v1195_v53 }
 0x8f5   : > { %v1197_v56 = vmul.f32 %v2113_v4, %v1196_v54 }
 0x8f7   : > { %v1198_v58 = vadd.f32 %v2113_v4, %v1197_v56 }
 0x8f9   : > { %v1202_v61 = vsel %vm1201_vm2, %v2113_v4, %v1198_v58 }
 0x8fa   : > { %v1207_v62 = vsel %vm1204_vm3, %v1206_v59, %v1202_v61 }
 0x8fb   : > { %v2773_v63 = vmul.f32 %v2111_v45, %v1207_v62 }
 0x8fd   : > { %1932 = vmatmul.msk.f32.vlgmr.msrb.gmra.mxu1 %vm1184_vm11, %v2773_v63 }
 0x901   : > { %v1428_v0 = vpop.permute.xlu1 %1427 }
 0x902   : > { %1944 = vmatpush.xpose.msk.msra.mxu0 %vm682_vm1, %v1428_v0 }
 0x905   : > { %1940 = vmatmul.msk.f32.vlgmr.msra.gmra.mxu1 %vm682_vm1, %v1334_v2  ;;  %1945 = vmatmul.msk.f32.vlgmr.msra.gmra.mxu0 %vm682_vm1, %v1426_v1 }
 0x92c   : > { %v1275_v3 = vpop.xlane.xlu1 %1274 }
 0x92d   : > { %v1276_v5 = vsub.f32 %v1270_v50, %v1275_v3 }
 0x92f   : > { %v1277_v6 = vmul.f32 1.442695, %v1276_v5 }
 0x931   : > { %2114 = vpow2.f32 %v1277_v6 }
 0x937   : > { %v2115_v8 = vpop.eup %2114 }
 0x938   : > { %v1279_v9 = vsel %vm1184_vm11, %v2115_v8, 0.0 }
 0x939   : > { %1280 = vadd.xlane.f32.xlu1 %v1279_v9 }
 0x952   : > { %1299 = vrot.lane.b32.xlu1 %v2739_v32, %s2404_s21 }
 0x95a   : > { %1481 = vrot.lane.b32.xlu1 %v2735_v30, %s2406_s26 }
 0x97a   : > { %v1237_v10 = vpop.f32.mrf.mxu1 }
 0x97b   : > { %1240 = vst.msk [vmem:[#allocation2] sm:$0xff] %vm682_vm1, %v1237_v10 }
 0x982   : > { %v1362_v11 = vpop.f32.mrf.mxu1  ;;  %v1454_v12 = vpop.f32.mrf.mxu0 }
 0x983   : > { %v1365_v13 = vsel %vm1184_vm11, %v1362_v11, -inf  ;;  %v1457_v14 = vsel %vm1184_vm11, %v1454_v12, -inf }
 0x984   : > { %1366 = vmax.xlane.f32.xlu0 %v1365_v13  ;;  %1458 = vmax.xlane.f32.xlu2 %v1457_v14 }
 0x99c   : > { %1297 = vrot.lane.b32.xlu2 %v2735_v30, %s2404_s21  ;;  %s2805_s21 = sshll.u32 %s622_s18, 3 }
 0x99d   : > { %s624_s20 = scalar_lea.vmem [#allocation14], %s2805_s21 }
 0x99e   : > { %s1732_s5 = sshll.u32 %s624_s20, 4  ;;  %s1733_s5 = int_to_ptr.vmem [resolvable:$true] %s1732_s5 }
 0x9ac   : > { %v1281_v15 = vpop.xlane.xlu1 %1280 }
 0x9ad   : > { %2116 = vrcp.f32 %v1281_v15  ;;  %v1293_v22 = vand.u32 2147483648, %v1281_v15  ;;  %vm1287_vm4 = vweird.f32 %v1281_v15  ;;  %v1291_v23 = vand.u32 2147483647, %v1281_v15 }
 0x9af   : > { %v1294_v31 = vor.u32 1.1754944e-38, %v1293_v22  ;;  %vm1292_vm8 = vcmp.eq.f32.partialorder %v1291_v23, 8.507059e+37 }
 0x9b3   : > { %v2117_v17 = vpop.eup %2116 }
 0x9b4   : > { %v1283_v18 = vmul.f32 %v2117_v17, %v1281_v15  ;;  %vm1288_vm1 = vweird.f32 %v2117_v17  ;;  %v1079_v15 = vld [vmem:[%s2927_s8 + $0x18] sm:$0xff] }
 0x9b5   : > { %vm1289_vm7 = vmor %vm1287_vm4, %vm1288_vm1  ;;  %1536 = vmatpush.msrb.mxu1 %v1079_v15 }
 0x9b6   : > { %v1284_v19 = vsub.f32 1.0, %v1283_v18  ;;  %v1076_v18 = vld [vmem:[%s2927_s8] sm:$0xff] }
 0x9b8   : > { %v1285_v21 = vmul.f32 %v2117_v17, %v1284_v19 }
 0x9ba   : > { %v1286_v7 = vadd.f32 %v2117_v17, %v1285_v21 }
 0x9bc   : > { %v1290_v29 = vsel %vm1289_vm7, %v2117_v17, %v1286_v7  ;;  %v1077_v17 = vld [vmem:[%s2927_s8 + $0x8] sm:$0xff] }
 0x9bd   : > { %v1295_v35 = vsel %vm1292_vm8, %v1294_v31, %v1290_v29  ;;  %v2087_v7 = vld [vmem:[#allocation9] ss:$0 sm:$0xff] }
 0x9be   : > { %v1296_v37 = vmul.f32 %v2115_v8, %v1295_v35  ;;  %v1575_v35 = vld [vmem:[#allocation11 + $0x10] sm:$0xff] }
 0x9c0   : > { %v1332_v62 = vadd.f32 %v1296_v37, %v2773_v63 }
 0x9c4   : > { %v1300_v16 = vpop.permute.xlu1 %1299 }
 0x9c5   : > { %1936 = vmatpush.msk.msrb.mxu2 %vm1217_vm12, %v1300_v16  ;;  %v1078_v16 = vld [vmem:[%s2927_s8 + $0x10] sm:$0xff] }
 0x9c6   : > { %1537 = vmatpush.msrb.mxu1 %v1078_v16 }
 0x9c8   : > { %1538 = vmatpush.msrb.mxu1 %v1077_v17 }
 0x9ca   : > { %1539 = vmatpush.msrb.mxu1 %v1076_v18 }
 0x9cc   : > { %v1482_v10 = vpop.permute.xlu1 %1481 }
 0x9f7   : > { %v1367_v24 = vpop.xlane.xlu0 %1366  ;;  %v1459_v25 = vpop.xlane.xlu2 %1458 }
 0x9f8   : > { %v1368_v26 = vsub.f32 %v1362_v11, %v1367_v24  ;;  %v1460_v28 = vsub.f32 %v1454_v12, %v1459_v25 }
 0x9fa   : > { %v1369_v33 = vmul.f32 1.442695, %v1368_v26  ;;  %v1461_v34 = vmul.f32 1.442695, %v1460_v28 }
 0x9fc   : > { %2118 = vpow2.f32 %v1369_v33 }
 0x9fd   : > { %2120 = vpow2.f32 %v1461_v34  ;;  %v1576_v34 = vld [vmem:[#allocation11 + $0x18] sm:$0xff] }
 0x9ff   : > { %v1298_v36 = vpop.permute.xlu2 %1297 }
 0xa00   : > { %1322 = vmatpush.msrb.mxu2 %v1298_v36  ;;  %v1574_v36 = vld [vmem:[#allocation11 + $0x8] sm:$0xff] }
 0xa01   : > { %1937 = vmatmul.msk.f32.vlgmr.msrb.gmra.mxu2 %vm1184_vm11, %v1296_v37  ;;  %v1573_v37 = vld [vmem:[#allocation11] sm:$0xff] }
 0xa02   : > { %v2119_v38 = vpop.eup %2118 }
 0xa03   : > { %v2121_v39 = vpop.eup %2120  ;;  %v1371_v40 = vsel %vm1184_vm11, %v2119_v38, 0.0 }
 0xa04   : > { %1372 = vadd.xlane.f32.xlu2 %v1371_v40  ;;  %v1463_v41 = vsel %vm1184_vm11, %v2121_v39, 0.0 }
 0xa05   : > { %1464 = vadd.xlane.f32.xlu0 %v1463_v41 }
 0xa19   : > { %1391 = vrot.lane.b32.xlu0 %v2739_v32, %s2407_s27 }
 0xa1c   : > { %1389 = vrot.lane.b32.xlu2 %v2735_v30, %s2407_s27  ;;  %s2967_s27 = smov 24  }
 0xa21   : > { %1483 = vrot.lane.b32.xlu0 %v2739_v32, %s2406_s26  ;;  %s2966_s26 = smov 16  }
 0xa77   : > { %v1373_v42 = vpop.xlane.xlu2 %1372 }
 0xa78   : > { %v1465_v43 = vpop.xlane.xlu0 %1464  ;;  %2122 = vrcp.f32 %v1373_v42  ;;  %v1385_v50 = vand.u32 2147483648, %v1373_v42  ;;  %v1383_v4 = vand.u32 2147483647, %v1373_v42  ;;  %vm1379_vm14 = vweird.f32 %v1373_v42 }
 0xa79   : > { %2124 = vrcp.f32 %v1465_v43  ;;  %v1477_v51 = vand.u32 2147483648, %v1465_v43  ;;  %v1475_v30 = vand.u32 2147483647, %v1465_v43  ;;  %vm1471_vm15 = vweird.f32 %v1465_v43 }
 0xa7a   : > { %v1386_v56 = vor.u32 1.1754944e-38, %v1385_v50  ;;  %vm1384_vm1 = vcmp.eq.f32.partialorder %v1383_v4, 8.507059e+37 }
 0xa7b   : > { %v1478_v57 = vor.u32 1.1754944e-38, %v1477_v51  ;;  %vm1476_vm4 = vcmp.eq.f32.partialorder %v1475_v30, 8.507059e+37 }
 0xa7e   : > { %v2123_v44 = vpop.eup %2122 }
 0xa7f   : > { %v2125_v45 = vpop.eup %2124  ;;  %v1375_v46 = vmul.f32 %v2123_v44, %v1373_v42  ;;  %vm1380_vm9 = vweird.f32 %v2123_v44  ;;  %v1390_v6 = vpop.permute.xlu2 %1389 }
 0xa80   : > { %v1467_v47 = vmul.f32 %v2125_v45, %v1465_v43  ;;  %vm1472_vm10 = vweird.f32 %v2125_v45  ;;  %vm1381_vm2 = vmor %vm1379_vm14, %vm1380_vm9  ;;  %vm1660_vm9 = vcmask 523264  }
 0xa81   : > { %v1376_v48 = vsub.f32 1.0, %v1375_v46  ;;  %vm1473_vm3 = vmor %vm1471_vm15, %vm1472_vm10  ;;  %v1569_v46 = vperm.slane %v2727_v20, 2 }
 0xa82   : > { %v1468_v49 = vsub.f32 1.0, %v1467_v47 }
 0xa83   : > { %v1377_v52 = vmul.f32 %v2123_v44, %v1376_v48 }
 0xa84   : > { %v1469_v53 = vmul.f32 %v2125_v45, %v1468_v49  ;;  %v1324_v32 = vpop.f32.mrf.mxu2  ;;  %v1571_v49 = vperm.slane %v2727_v20, 3 }
 0xa85   : > { %v1378_v54 = vadd.f32 %v2123_v44, %v1377_v52  ;;  %1328 = vrot.lane.b32.xlu0 %v1324_v32, %s2965_s3  ;;  %v2088_v52 = vld [vmem:[#allocation12] ss:$0 sm:$0xff]  ;;  %s2326_s3 = sshra.s32 %s1735_s15, 4  ;;  %s2327_s3 = int_to_ptr.hbm [resolvable:$true] %s2326_s3 }
 0xa86   : > { %v1470_v55 = vadd.f32 %v2125_v45, %v1469_v53  ;;  %p2333_p3 = scmp.lt.s32.totalorder %s2327_s3, %s2935_s16 }
 0xa87   : > { %v1382_v58 = vsel %vm1381_vm2, %v2123_v44, %v1378_v54 }
 0xa88   : > { %v1474_v59 = vsel %vm1473_vm3, %v2125_v45, %v1470_v55  ;;  %v1387_v61 = vsel %vm1384_vm1, %v1386_v56, %v1382_v58  ;;  %v1655_v55 = vld [vmem:[%s2931_s12 + $0x38] sm:$0xff]  ;;  %v1654_v58 = vld [vmem:[%s2931_s12 + $0x30] sm:$0xff] }
 0xa89   : > { %v1479_v0 = vsel %vm1476_vm4, %v1478_v57, %v1474_v59  ;;  %v1388_v1 = vmul.f32 %v2119_v38, %v1387_v61  ;;  %1672 = vmatpush.msrb.mxu0 %v1655_v55 }
 0xa8a   : > { %v1480_v5 = vmul.f32 %v2121_v39, %v1479_v0 }
 0xa8b   : > { %v1392_v2 = vpop.permute.xlu0 %1391  ;;  %v1424_v3 = vadd.f32 %v1388_v1, %v1332_v62  ;;  %1673 = vmatpush.msrb.mxu0 %v1654_v58  ;;  %v1653_v62 = vld [vmem:[%s2931_s12 + $0x28] sm:$0xff] }
 0xa8c   : > { %1941 = vmatpush.msk.msra.mxu3 %vm1217_vm12, %v1392_v2  ;;  %v1652_v2 = vld [vmem:[%s2931_s12 + $0x20] sm:$0xff] }
 0xa8d   : > { %v1516_v8 = vadd.f32 %v1480_v5, %v1424_v3  ;;  %1674 = vmatpush.msrb.mxu0 %v1653_v62 }
 0xa8e   : > { %1414 = vmatpush.msra.mxu3 %v1390_v6 }
 0xa8f   : > { %1942 = vmatmul.msk.f32.vlgmr.msra.gmra.mxu3 %vm1184_vm11, %v1388_v1  ;;  %v1544_v9 = vmul.f32 0.25, %v1516_v8  ;;  %1675 = vmatpush.msrb.mxu0 %v1652_v2 }
 0xa90   : > { %1596 = vmatpush.msrb.mxu3 %v1576_v34 }
 0xa91   : > { %1545 = vst.msk [vmem:[%s624_s20] sm:$0xff] %vm1184_vm11, %v1544_v9  ;;  %v1650_v9 = vld [vmem:[%s2931_s12 + $0x10] sm:$0xff] }
 0xa92   : > { %1597 = vmatpush.msrb.mxu3 %v1575_v35 }
 0xa93   : > { %v1484_v63 = vpop.permute.xlu0 %1483 }
 0xa94   : > { %1946 = vmatpush.msk.msra.mxu2 %vm1217_vm12, %v1484_v63  ;;  %1598 = vmatpush.msrb.mxu3 %v1574_v36 }
 0xa96   : > { %1506 = vmatpush.msra.mxu2 %v1482_v10  ;;  %1599 = vmatpush.msrb.mxu3 %v1573_v37  ;;  %v1649_v10 = vld [vmem:[%s2931_s12 + $0x8] sm:$0xff] }
 0xa97   : > { %1947 = vmatmul.msk.f32.vlgmr.msra.gmra.mxu2 %vm1184_vm11, %v1480_v5  ;;  %v1651_v5 = vld [vmem:[%s2931_s12 + $0x18] sm:$0xff] }
 0xa98   : > { %1676 = vmatpush.msrb.mxu0 %v1651_v5 }
 0xa9a   : > { %1677 = vmatpush.msrb.mxu0 %v1650_v9 }
 0xa9c   : > { %1678 = vmatpush.msrb.mxu0 %v1649_v10 }
 0xaf7   : > { %v1329_v11 = vpop.permute.xlu0 %1328 }
 0xaf8   : > { %1331 = vst.msk [vmem:[#allocation2] sm:$0xff] %vm840_vm13, %v1329_v11 }
 0xb12   : > { %v1416_v12 = vpop.f32.mrf.mxu3 }
 0xb13   : > { %1420 = vrot.lane.b32.xlu2 %v1416_v12, %s2966_s26  ;;  %v1648_v12 = vld [vmem:[%s2931_s12] sm:$0xff]  ;;  %s2328_s26 = scalar_lea.hbm %s2327_s3, 8 }
 0xb14   : > { %1679 = vmatpush.msrb.mxu0 %v1648_v12  ;;  %p2329_p0 = scmp.ne.s32.totalorder %s2327_s3, %s2328_s26  ;;  %p2334_p4 = scmp.lt.s32.totalorder %s2332_s29, %s2328_s26 }
 0xb16   : > { %p2330_p1 = pnand %p2329_p0, %p2538_p5  ;;  %p2335_p7 = por %p2334_p4, %p2333_p3 }
 0xb18   : > { %p2331_p2 = pneg %p2330_p1 }
 0xb1a   : > { %v1508_v13 = vpop.f32.mrf.mxu2  ;;  %p2336_p8 = pnand %p2335_p7, %p2331_p2 }
 0xb1b   : > { %1512 = vrot.lane.b32.xlu1 %v1508_v13, %s2967_s27 }
 0xb6d   : > { %v1421_v14 = vpop.permute.xlu2 %1420 }
 0xb6e   : > { %1423 = vst.msk [vmem:[#allocation2] sm:$0xff] %vm924_vm5, %v1421_v14 }
 0xb8d   : > { %v1513_v19 = vpop.permute.xlu1 %1512 }
 0xb8e   : > { %1515 = vst.msk [vmem:[#allocation2] sm:$0xff] %vm1008_vm6, %v1513_v19 }
 0xb95   : > { %v1517_v21 = vld [vmem:[#allocation2] sm:$0xff] }
 0xb96   : > { %1948 = vmatmul.msk.f32.vlgmr.msrb.gmra.mxu1 %vm655_vm0, %v1517_v21 }
 0xc13   : > { %v1541_v22 = vpop.f32.mrf.mxu1 }
 0xc14   : > { %v1542_v23 = vadd.f32 %v2087_v7, %v1541_v22 }
 0xc16   : > { %v1546_v24 = vadd.f32 %v1542_v23, %v2731_v27 }
 0xc18   : > { %v1547_v25 = vsel %vm655_vm0, %v1546_v24, 0.0 }
 0xc19   : > { %1548 = vadd.xlane.f32.xlu0 %v1547_v25 }
 0xc8c   : > { %v1549_v26 = vpop.xlane.xlu0 %1548 }
 0xc8d   : > { %v1550_v28 = vmul.f32 %v1549_v26, %v2712_v60 }
 0xc8f   : > { %v1551_v29 = vsub.f32 %v1546_v24, %v1550_v28 }
 0xc91   : > { %v1552_v31 = vmul.f32 %v1551_v29, %v1551_v29 }
 0xc93   : > { %v1553_v33 = vsel %vm655_vm0, %v1552_v31, 0.0 }
 0xc94   : > { %1554 = vadd.xlane.f32.xlu2 %v1553_v33 }
 0xd07   : > { %v1555_v27 = vpop.xlane.xlu2 %1554 }
 0xd08   : > { %v1556_v38 = vmul.f32 %v1555_v27, %v2712_v60 }
 0xd0a   : > { %v1557_v39 = vadd.f32 1e-12, %v1556_v38 }
 0xd0c   : > { %2126 = vrsqrt.f32 %v1557_v39  ;;  %vm1564_vm5 = vweird.f32 %v1557_v39 }
 0xd12   : > { %v2127_v40 = vpop.eup %2126 }
 0xd13   : > { %v1559_v41 = vmul.f32 %v2127_v40, %v1557_v39  ;;  %vm1565_vm13 = vweird.f32 %v2127_v40 }
 0xd14   : > { %vm1566_vm6 = vmor %vm1564_vm5, %vm1565_vm13 }
 0xd15   : > { %v1560_v42 = vmul.f32 %v2127_v40, %v1559_v41 }
 0xd17   : > { %v1561_v43 = vmul.f32 0.5, %v1560_v42 }
 0xd19   : > { %v1562_v44 = vsub.f32 1.5, %v1561_v43 }
 0xd1b   : > { %v1563_v45 = vmul.f32 %v2127_v40, %v1562_v44 }
 0xd1d   : > { %v1567_v47 = vsel %vm1566_vm6, %v2127_v40, %v1563_v45  ;;  %v2089_v40 = vld [vmem:[%s2932_s13] ss:$0 sm:$0xff] }
 0xd1e   : > { %v1568_v48 = vmul.f32 %v1567_v47, %v1551_v29 }
 0xd20   : > { %v1570_v50 = vmul.f32 %v1569_v46, %v1568_v48 }
 0xd22   : > { %v2840_v51 = vadd.f32 %v1571_v49, %v1570_v50 }
 0xd24   : > { %1949 = vmatmul.msk.f32.vlgmr.msrb.gmra.mxu3 %vm655_vm0, %v2840_v51 }
 0xda7   : > { %v1601_v4 = vpop.f32.mrf.mxu3 }
 0xda8   : > { %v1602_v53 = vadd.f32 %v2088_v52, %v1601_v4 }
 0xdaa   : > { %v1605_v30 = vmul.f32 0.70710677, %v1602_v53  ;;  %v1604_v27 = vmul.f32 0.5, %v1602_v53 }
 0xdac   : > { %v1606_v32 = vmul.f32 %v1605_v30, %v1605_v30 }
 0xdae   : > { %v1607_v54 = vmin.f32 %v1606_v32, 16.0 }
 0xdb0   : > { %v1608_v56 = vmul.f32 2.1237322e-06, %v1607_v54  ;;  %v1619_v57 = vmul.f32 3.8918573e-05, %v1607_v54 }
 0xdb2   : > { %v1609_v59 = vadd.f32 0.00028619796, %v1608_v56  ;;  %v1620_v61 = vadd.f32 0.001143296, %v1619_v57 }
 0xdb4   : > { %v1610_v0 = vmul.f32 %v1609_v59, %v1607_v54  ;;  %v1621_v1 = vmul.f32 %v1620_v61, %v1607_v54 }
 0xdb6   : > { %v1622_v3 = vadd.f32 0.014752088, %v1621_v1  ;;  %v1611_v6 = vadd.f32 0.0036580483, %v1610_v0 }
 0xdb8   : > { %v1623_v8 = vmul.f32 %v1622_v3, %v1607_v54  ;;  %v1612_v11 = vmul.f32 %v1611_v6, %v1607_v54 }
 0xdba   : > { %v1624_v63 = vadd.f32 0.112945676, %v1623_v8  ;;  %v1613_v15 = vadd.f32 0.05243302, %v1612_v11 }
 0xdbc   : > { %v1625_v13 = vmul.f32 %v1624_v63, %v1607_v54  ;;  %v1614_v18 = vmul.f32 %v1613_v15, %v1607_v54 }
 0xdbe   : > { %v1626_v14 = vadd.f32 0.4994258, %v1625_v13  ;;  %v1615_v19 = vadd.f32 0.18741608, %v1614_v18 }
 0xdc0   : > { %v1627_v16 = vmul.f32 %v1626_v14, %v1607_v54  ;;  %v1616_v7 = vmul.f32 %v1615_v19, %v1607_v54 }
 0xdc2   : > { %v1628_v17 = vadd.f32 1.0, %v1627_v16  ;;  %v1617_v25 = vadd.f32 1.1283791, %v1616_v7 }
 0xdc4   : > { %2128 = vrcp.f32 %v1628_v17  ;;  %v1640_v24 = vand.u32 2147483648, %v1628_v17  ;;  %v1638_v28 = vand.u32 2147483647, %v1628_v17  ;;  %vm1634_vm12 = vweird.f32 %v1628_v17 }
 0xdc5   : > { %v1618_v33 = vmul.f32 %v1617_v25, %v1605_v30 }
 0xdc6   : > { %v1641_v31 = vor.u32 1.1754944e-38, %v1640_v24  ;;  %vm1639_vm8 = vcmp.eq.f32.partialorder %v1638_v28, 8.507059e+37 }
 0xdca   : > { %v2129_v21 = vpop.eup %2128 }
 0xdcb   : > { %v1630_v22 = vmul.f32 %v2129_v21, %v1628_v17  ;;  %vm1635_vm11 = vweird.f32 %v2129_v21 }
 0xdcc   : > { %vm1636_vm7 = vmor %vm1634_vm12, %vm1635_vm11 }
 0xdcd   : > { %v1631_v23 = vsub.f32 1.0, %v1630_v22 }
 0xdcf   : > { %v1632_v26 = vmul.f32 %v2129_v21, %v1631_v23 }
 0xdd1   : > { %v1633_v29 = vadd.f32 %v2129_v21, %v1632_v26 }
 0xdd3   : > { %v1637_v34 = vsel %vm1636_vm7, %v2129_v21, %v1633_v29 }
 0xdd4   : > { %v1642_v35 = vsel %vm1639_vm8, %v1641_v31, %v1637_v34 }
 0xdd5   : > { %v1643_v36 = vmul.f32 %v1642_v35, %v1618_v33 }
 0xdd7   : > { %v1950_v37 = vclamps-f32 %v1643_v36, 1.0 }
 0xdd9   : > { %v1646_v38 = vadd.f32 1.0, %v1950_v37 }
 0xddb   : > { %v1647_v39 = vmul.f32 %v1646_v38, %v1604_v27 }
 0xddd   : > { %1951 = vmatmul.msk.f32.vlgmr.msrb.gmra.mxu0 %vm1660_vm9, %v1647_v39 }
 0xe5a   : > { %v1681_v41 = vpop.f32.mrf.mxu0 }
 0xe5b   : > { %v1682_v42 = vadd.f32 %v2089_v40, %v1681_v41 }
 0xe5d   : > { %v1684_v43 = vadd.f32 %v1682_v42, %v2840_v51 }
 0xe5f   : > { %v1685_v44 = vsel %vm655_vm0, %v1684_v43, 0.0 }
 0xe60   : > { %1686 = vadd.xlane.f32.xlu1 %v1685_v44 }
 0xed3   : > { %v1687_v45 = vpop.xlane.xlu1 %1686 }
 0xed4   : > { %v1688_v46 = vmul.f32 %v1687_v45, %v2712_v60 }
 0xed6   : > { %v1689_v47 = vsub.f32 %v1684_v43, %v1688_v46 }
 0xed8   : > { %v1690_v48 = vmul.f32 %v1689_v47, %v1689_v47 }
 0xeda   : > { %v1691_v49 = vsel %vm655_vm0, %v1690_v48, 0.0 }
 0xedb   : > { %1692 = vadd.xlane.f32.xlu0 %v1691_v49 }
 0xedc   : > { %2339 = shalt.err (!%p2336_p8)
}
 0xedd   : > { %1981 = dma.vmem_to_hbm [thread:$0]  (%p2538_p5), %s1733_s5, 128, %s1735_s15, %s1717_s19   ;;  %v1707_v56 = vperm.slane %v2727_v20, 4  ;;  %v1709_v58 = vperm.slane %v2727_v20, 5 }
 0xede   : > { %s2968_s0 = sshll.u32 %s2611_s9, 3  ;;  %s2969_s20 = sld [smem:[#allocation30_spill]] }
 0xee4   : > { %s637_s17 = scalar_lea.vmem %s2969_s20, %s2968_s0 }
 0xf4e   : > { %v1693_v50 = vpop.xlane.xlu0 %1692 }
 0xf4f   : > { %v1694_v51 = vmul.f32 %v1693_v50, %v2712_v60 }
 0xf51   : > { %v1695_v52 = vadd.f32 1e-12, %v1694_v51 }
 0xf53   : > { %2130 = vrsqrt.f32 %v1695_v52  ;;  %vm1702_vm14 = vweird.f32 %v1695_v52 }
 0xf59   : > { %v2131_v4 = vpop.eup %2130 }
 0xf5a   : > { %v1697_v53 = vmul.f32 %v2131_v4, %v1695_v52  ;;  %vm1703_vm10 = vweird.f32 %v2131_v4 }
 0xf5b   : > { %vm1704_vm15 = vmor %vm1702_vm14, %vm1703_vm10 }
 0xf5c   : > { %v1698_v30 = vmul.f32 %v2131_v4, %v1697_v53 }
 0xf5e   : > { %v1699_v32 = vmul.f32 0.5, %v1698_v30 }
 0xf60   : > { %v1700_v54 = vsub.f32 1.5, %v1699_v32 }
 0xf62   : > { %v1701_v55 = vmul.f32 %v2131_v4, %v1700_v54 }
 0xf64   : > { %v1705_v57 = vsel %vm1704_vm15, %v2131_v4, %v1701_v55 }
 0xf65   : > { %v1706_v59 = vmul.f32 %v1705_v57, %v1689_v47 }
 0xf67   : > { %v1708_v61 = vmul.f32 %v1707_v56, %v1706_v59 }
 0xf69   : > { %v1710_v60 = vadd.f32 %v1709_v58, %v1708_v61 }
 0xf6b   : > { %1711 = vst.msk [vmem:[%s637_s17] sm:$0xff] %vm655_vm0, %v1710_v60 }
 0xf6c PF: > { %s2970_s28 = sld [smem:[#allocation22_spill]] }
 0xf6d   : > { %s2971_s30 = sld [smem:[#allocation20_spill]] }
 0xf72   : > { %p2018_p5 = scmp.ge.s32.totalorder %s2970_s28, 2 }
 0xf73   : > { %s1753_s15 = sand.u32 1, %s2971_s30  }
 0xf74   : > { %p2003_p9 = pnand %p2018_p5, %p2542_p6  ;;  %s1754_s19 = scalar_lea.sflag [#allocation5], %s1753_s15 }
 0xf76   : > { %p2004_p10 = pneg %p2003_p9 }
 0xf78   : > { %2373 = dma.done.wait (%p2004_p10), %s1754_s19, 128  }
 0xf79   : > { %2375 = vsyncadd (%p2004_p10), %s1754_s19, 4294967168  ;;  %s2973_s24 = sld [smem:[#allocation23_spill]]  ;;  %s2976_s21 = smov %s2382_s22 }
 0xf7a   : > { %s2974_s9 = sld [smem:[#allocation21_spill]] }
 0xf7b   : > { %s2975_s23 = sld [smem:[#allocation24_spill]] }
 0xf7f   : > { %p31_p11 = scmp.ge.s32.totalorder %s2973_s24, 4  }
 0xf80   : > { %s2977_s22 = smov %s2974_s9 }
 0xf81   :  { %33 = sbr.rel (!%p31_p11) target bundleno = 13 (0xd), region = 155 }
 0xf86   :  { %1760 = vsyncpa [#allocation4], 1 }
 0xf87   :  { %1762 = vsyncpa [#allocation4 + $0x1], 1 }
 0xf88   :  { %1763 = vsyncpa [#allocation7], 1 }
 0xf89   :  { %1764 = vsyncpa [#allocation10], 1 }
 0xf8a   :  { %1765 = vsyncpa [#allocation13], 1 }
 0xf8b   :  { %1766 = vsyncpa [#allocation5], 1 }
 0xf8c   :  { %1768 = vsyncpa [#allocation5 + $0x1], 1 }

</bundles_post_ra>
